<compile_context>
chip_gen: v7x
topology: tpu7x:2x2x1
jax: 0.10.0
libtpu: 0.0.40
codegen_flags: <defaults>
</compile_context>

<pallas_src>
import math

import jax
import jax.numpy as jnp
from jax.experimental import pallas as pl
from jax.experimental.pallas import tpu as pltpu

INPUT_SZ = 3
ACTION_SPACE = 1
HIDDEN = 256


def _round_up(x, m):
    return ((x + m - 1) // m) * m


def qnet_kernel(state_ref, action_ref,
                w1_ref, b1_ref,
                w2a_ref, w2b_ref, b2_ref,
                w3_ref, b3_ref,
                out_ref):
    # Shapes (feature-major, batch on lanes):
    #   state_ref : (3, TB) f32      action_ref: (1, TB) f32
    #   w1_ref    : (256, 3) f32     b1_ref    : (256, 1) f32
    #   w2a_ref   : (256, 256) bf16  w2b_ref   : (256, 1) f32  b2_ref: (256, 1)
    #   w3_ref    : (256, 1) f32     b3_ref    : (1,) f32 in SMEM
    #   out_ref   : (1, TB) f32
    s = state_ref[...]
    a = action_ref[...]
    w1 = w1_ref[...]

    # Layer 1: K=3 "matmul" done as three VPU broadcast FMAs (an MXU call here
    # would be <3% utilized and lengthens the serial MXU chain).
    h1 = (w1[:, 0:1] * s[0:1, :]
          + w1[:, 1:2] * s[1:2, :]
          + w1[:, 2:3] * s[2:3, :]
          + b1_ref[...])
    h1 = jnp.maximum(h1, 0.0)                          # (256, TB) f32

    # Layer 2: the only real matmul -> MXU, bf16 operands, f32 accumulation.
    h2 = jnp.dot(w2a_ref[...], h1.astype(jnp.bfloat16),
                 preferred_element_type=jnp.float32)   # (256, TB) f32
    # Action contribution (K=1 outer product) on the VPU, biases in f32.
    h2 = h2 + w2b_ref[...] * a + b2_ref[...]
    h2 = jnp.maximum(h2, 0.0)

    # Layer 3: reduce over the feature (sublane) axis -> lane-dense (1, TB)
    # output row; keeps the final layer off the MXU (XLU has slack).
    out_ref[...] = (jnp.sum(h2 * w3_ref[...], axis=0, keepdims=True)
                    + b3_ref[0])


def qnet_forward(state, action, params):
    """state: (B, INPUT_SZ) f32, action: (B, ACTION_SPACE) f32 -> (B, 1) f32."""
    B = state.shape[0]
    w1, b1, w2a_bf16, w2b, b2, w3, b3 = params

    # Batch tile: multiple of 256 (one MXU tile per 256-row slab on v6e/v7x),
    # capped at 512 so the per-step VMEM footprint stays far under v7x's
    # 64 MiB while still amortizing the ~0.35us per-step overhead.
    tb = min(512, _round_up(max(B, 1), 256))
    b_pad = _round_up(B, tb)
    num_blocks = b_pad // tb
    pad = b_pad - B

    # Wrapper-side layout plumbing: pad the batch and go feature-major so the
    # batch lands on the lane axis inside the kernel.
    state_t = jnp.pad(state.astype(jnp.float32), ((0, pad), (0, 0))).T   # (3, B_pad)
    action_t = jnp.pad(action.astype(jnp.float32), ((0, pad), (0, 0))).T  # (1, B_pad)

    def batch_spec(rows):
        return pl.BlockSpec((rows, tb), lambda i: (0, i))

    def resident_spec(shape):
        # Constant block index -> weights/biases stay VMEM-resident across the
        # whole grid (Pallas skips re-DMA when the block index is unchanged).
        return pl.BlockSpec(shape, lambda i: (0,) * len(shape))

    out = pl.pallas_call(
        qnet_kernel,
        out_shape=jax.ShapeDtypeStruct((1, b_pad), jnp.float32),
        grid=(num_blocks,),
        in_specs=[
            batch_spec(INPUT_SZ),                  # state_t  (3, B_pad)
            batch_spec(ACTION_SPACE),              # action_t (1, B_pad)
            resident_spec(w1.shape),               # (256, 3)
            resident_spec(b1.shape),               # (256, 1)
            resident_spec(w2a_bf16.shape),         # (256, 256) bf16
            resident_spec(w2b.shape),              # (256, 1)
            resident_spec(b2.shape),               # (256, 1)
            resident_spec(w3.shape),               # (256, 1)
            pl.BlockSpec(memory_space=pltpu.MemorySpace.SMEM),   # b3 (1,)
        ],
        out_specs=pl.BlockSpec((1, tb), lambda i: (0, i)),
        compiler_params=pltpu.CompilerParams(
            dimension_semantics=("parallel",)),    # shard batch over 2 TCs (v7x)
    )(state_t, action_t, w1, b1, w2a_bf16, w2b, b2, w3, b3)

    return out[0, :B][:, None]


def init_qnet_params(key):
    """Deterministic init mimicking torch.nn.Linear default:
    U(-1/sqrt(fan_in), 1/sqrt(fan_in)) for weight and bias.

    Storage layout (feature-major, matching the kernel):
      w1 : (256, 3)  f32      b1: (256, 1) f32
      w2a: (256, 256) bf16    (columns of ln2.weight that multiply h1)
      w2b: (256, 1)  f32      (column of ln2.weight that multiplies action)
      b2 : (256, 1)  f32
      w3 : (256, 1)  f32      (ln3.weight transposed)     b3: (1,) f32
    """
    keys = jax.random.split(key, 6)

    def linear(kw, kb, fan_in, fan_out):
        bound = 1.0 / math.sqrt(fan_in)
        w = jax.random.uniform(kw, (fan_out, fan_in), jnp.float32,
                               minval=-bound, maxval=bound)   # torch layout
        b = jax.random.uniform(kb, (fan_out,), jnp.float32,
                               minval=-bound, maxval=bound)
        return w, b

    w1, b1 = linear(keys[0], keys[1], INPUT_SZ, HIDDEN)
    w2, b2 = linear(keys[2], keys[3], HIDDEN + ACTION_SPACE, HIDDEN)
    w3, b3 = linear(keys[4], keys[5], HIDDEN, 1)

    return (w1,                                     # (256, 3)
            b1[:, None],                            # (256, 1)
            w2[:, :HIDDEN].astype(jnp.bfloat16),    # (256, 256) bf16
            w2[:, HIDDEN:],                         # (256, 1)
            b2[:, None],                            # (256, 1)
            w3.T,                                   # (256, 1)
            b3)                                     # (1,)


def qnet_reference(state, action, params):
    """Pure-JAX f32 reference using the same stored weights.  The kernel
    additionally rounds the ln2 matmul operands to bf16 (f32-accumulated),
    hence the slightly loosened tolerance in the test below."""
    w1, b1, w2a_bf16, w2b, b2, w3, b3 = params
    w2 = jnp.concatenate([w2a_bf16.astype(jnp.float32), w2b], axis=1)  # (256,257)
    h1 = jnp.maximum(state @ w1.T + b1[:, 0], 0.0)
    x = jnp.concatenate([h1, action], axis=1)
    h2 = jnp.maximum(x @ w2.T + b2[:, 0], 0.0)
    return h2 @ w3 + b3


if __name__ == "__main__":
    key = jax.random.PRNGKey(0)
    k_params, k_state, k_action = jax.random.split(key, 3)

    B = 8  # small RL-style batch
    params = init_qnet_params(k_params)
    state = jax.random.normal(k_state, (B, INPUT_SZ), jnp.float32)
    action = jax.random.normal(k_action, (B, ACTION_SPACE), jnp.float32)

    fwd = jax.jit(qnet_forward)
    out = jax.block_until_ready(fwd(state, action, params))

    ref = qnet_reference(state, action, params)
    assert out.shape == (B, 1), out.shape
    # bf16 operands on the one MXU matmul => loosened (but still tight for a
    # DDPG critic) tolerance vs the pure-f32 reference.
    assert jnp.allclose(out, ref, atol=1e-2, rtol=1e-2), (out, ref)

    print("KERNEL_OK")
</pallas_src>

<mosaic_0001>
module attributes {stable_mosaic.version = 11 : i64} {
  func.func @qnet_kernel(%arg0: i32, %arg1: memref<3x256xf32, #tpu.memory_space<vmem>>, %arg2: memref<1x256xf32, #tpu.memory_space<vmem>>, %arg3: memref<256x3xf32, #tpu.memory_space<vmem>>, %arg4: memref<256x1xf32, #tpu.memory_space<vmem>>, %arg5: memref<256x256xbf16, #tpu.memory_space<vmem>>, %arg6: memref<256x1xf32, #tpu.memory_space<vmem>>, %arg7: memref<256x1xf32, #tpu.memory_space<vmem>>, %arg8: memref<256x1xf32, #tpu.memory_space<vmem>>, %arg9: memref<1xf32, #tpu.memory_space<smem>>, %arg10: memref<1x256xf32, #tpu.memory_space<vmem>>) attributes {dimension_semantics = [#tpu.dimension_semantics<parallel>], iteration_bounds = array<i64: 1>, scalar_prefetch = 0 : i64, scratch_operands = 0 : i64, tpu.core_type = #tpu.core_type<tc>, window_params = [{transform_indices = @transform_0, window_bounds = array<i64: 3, 256>}, {transform_indices = @transform_1, window_bounds = array<i64: 1, 256>}, {pipeline_mode = #tpu.pipeline_mode<synchronous>, transform_indices = @transform_2, window_bounds = array<i64: 256, 3>}, {pipeline_mode = #tpu.pipeline_mode<synchronous>, transform_indices = @transform_3, window_bounds = array<i64: 256, 1>}, {pipeline_mode = #tpu.pipeline_mode<synchronous>, transform_indices = @transform_4, window_bounds = array<i64: 256, 256>}, {pipeline_mode = #tpu.pipeline_mode<synchronous>, transform_indices = @transform_5, window_bounds = array<i64: 256, 1>}, {pipeline_mode = #tpu.pipeline_mode<synchronous>, transform_indices = @transform_6, window_bounds = array<i64: 256, 1>}, {pipeline_mode = #tpu.pipeline_mode<synchronous>, transform_indices = @transform_7, window_bounds = array<i64: 256, 1>}, {transform_indices = @transform_8, window_bounds = array<i64: 1>}, {transform_indices = @transform_9, window_bounds = array<i64: 1, 256>}]} {
    %c0 = arith.constant 0 : index
    %c0_0 = arith.constant 0 : index
    %0 = vector.load %arg1[%c0, %c0_0] : memref<3x256xf32, #tpu.memory_space<vmem>>, vector<3x256xf32>
    %c0_1 = arith.constant 0 : index
    %c0_2 = arith.constant 0 : index
    %1 = vector.load %arg2[%c0_1, %c0_2] : memref<1x256xf32, #tpu.memory_space<vmem>>, vector<1x256xf32>
    %c0_3 = arith.constant 0 : index
    %c0_4 = arith.constant 0 : index
    %2 = vector.load %arg3[%c0_3, %c0_4] : memref<256x3xf32, #tpu.memory_space<vmem>>, vector<256x3xf32>
    %3 = vector.extract_strided_slice %2 {offsets = [0, 0], sizes = [256, 1], strides = [1, 1]} : vector<256x3xf32> to vector<256x1xf32>
    %4 = vector.extract_strided_slice %0 {offsets = [0, 0], sizes = [1, 256], strides = [1, 1]} : vector<3x256xf32> to vector<1x256xf32>
    %5 = vector.broadcast %3 : vector<256x1xf32> to vector<256x256xf32>
    %6 = vector.broadcast %4 : vector<1x256xf32> to vector<256x256xf32>
    %7 = arith.mulf %5, %6 : vector<256x256xf32>
    %8 = vector.extract_strided_slice %2 {offsets = [0, 1], sizes = [256, 1], strides = [1, 1]} : vector<256x3xf32> to vector<256x1xf32>
    %9 = vector.extract_strided_slice %0 {offsets = [1, 0], sizes = [1, 256], strides = [1, 1]} : vector<3x256xf32> to vector<1x256xf32>
    %10 = vector.broadcast %8 : vector<256x1xf32> to vector<256x256xf32>
    %11 = vector.broadcast %9 : vector<1x256xf32> to vector<256x256xf32>
    %12 = arith.mulf %10, %11 : vector<256x256xf32>
    %13 = arith.addf %7, %12 : vector<256x256xf32>
    %14 = vector.extract_strided_slice %2 {offsets = [0, 2], sizes = [256, 1], strides = [1, 1]} : vector<256x3xf32> to vector<256x1xf32>
    %15 = vector.extract_strided_slice %0 {offsets = [2, 0], sizes = [1, 256], strides = [1, 1]} : vector<3x256xf32> to vector<1x256xf32>
    %16 = vector.broadcast %14 : vector<256x1xf32> to vector<256x256xf32>
    %17 = vector.broadcast %15 : vector<1x256xf32> to vector<256x256xf32>
    %18 = arith.mulf %16, %17 : vector<256x256xf32>
    %19 = arith.addf %13, %18 : vector<256x256xf32>
    %c0_5 = arith.constant 0 : index
    %c0_6 = arith.constant 0 : index
    %20 = vector.load %arg4[%c0_5, %c0_6] : memref<256x1xf32, #tpu.memory_space<vmem>>, vector<256x1xf32>
    %21 = vector.broadcast %20 : vector<256x1xf32> to vector<256x256xf32>
    %22 = arith.addf %19, %21 : vector<256x256xf32>
    %cst = arith.constant 0.000000e+00 : f32
    %23 = vector.broadcast %cst : f32 to vector<256x256xf32>
    %24 = arith.maximumf %22, %23 : vector<256x256xf32>
    %c0_7 = arith.constant 0 : index
    %c0_8 = arith.constant 0 : index
    %25 = vector.load %arg5[%c0_7, %c0_8] : memref<256x256xbf16, #tpu.memory_space<vmem>>, vector<256x256xbf16>
    %26 = arith.truncf %24 : vector<256x256xf32> to vector<256x256xbf16>
    %cst_9 = arith.constant dense<0.000000e+00> : vector<256x256xf32>
    %27 = tpu.matmul %25, %26, %cst_9 {dimension_numbers = #tpu.dot_dimension_numbers<[1], [0], [0], [1], [0, 0, 1, 1], [], []>} : vector<256x256xbf16>, vector<256x256xbf16>, vector<256x256xf32> -> vector<256x256xf32>
    %c0_10 = arith.constant 0 : index
    %c0_11 = arith.constant 0 : index
    %28 = vector.load %arg6[%c0_10, %c0_11] : memref<256x1xf32, #tpu.memory_space<vmem>>, vector<256x1xf32>
    %29 = vector.broadcast %28 : vector<256x1xf32> to vector<256x256xf32>
    %30 = vector.broadcast %1 : vector<1x256xf32> to vector<256x256xf32>
    %31 = arith.mulf %29, %30 : vector<256x256xf32>
    %32 = arith.addf %27, %31 : vector<256x256xf32>
    %c0_12 = arith.constant 0 : index
    %c0_13 = arith.constant 0 : index
    %33 = vector.load %arg7[%c0_12, %c0_13] : memref<256x1xf32, #tpu.memory_space<vmem>>, vector<256x1xf32>
    %34 = vector.broadcast %33 : vector<256x1xf32> to vector<256x256xf32>
    %35 = arith.addf %32, %34 : vector<256x256xf32>
    %cst_14 = arith.constant 0.000000e+00 : f32
    %36 = vector.broadcast %cst_14 : f32 to vector<256x256xf32>
    %37 = arith.maximumf %35, %36 : vector<256x256xf32>
    %c0_15 = arith.constant 0 : index
    %c0_16 = arith.constant 0 : index
    %38 = vector.load %arg8[%c0_15, %c0_16] : memref<256x1xf32, #tpu.memory_space<vmem>>, vector<256x1xf32>
    %39 = vector.broadcast %38 : vector<256x1xf32> to vector<256x256xf32>
    %40 = arith.mulf %37, %39 : vector<256x256xf32>
    %cst_17 = arith.constant dense<0.000000e+00> : vector<256xf32>
    %41 = vector.multi_reduction <add>, %40, %cst_17 [0] : vector<256x256xf32> to vector<256xf32>
    %42 = vector.shape_cast %41 : vector<256xf32> to vector<1x256xf32>
    %c0_18 = arith.constant 0 : index
    %43 = memref.load %arg9[%c0_18] : memref<1xf32, #tpu.memory_space<smem>>
    %44 = vector.broadcast %43 : f32 to vector<1x256xf32>
    %45 = arith.addf %42, %44 : vector<1x256xf32>
    %c0_19 = arith.constant 0 : index
    %c0_20 = arith.constant 0 : index
    %46 = vector.load %arg10[%c0_19, %c0_20] : memref<1x256xf32, #tpu.memory_space<vmem>>, vector<1x256xf32>
    tpu.vector_store %arg10[%c0_19, %c0_20], %45 {strides = array<i32>} : memref<1x256xf32, #tpu.memory_space<vmem>>, vector<1x256xf32>,
    return
  }
  func.func @transform_0(%arg0: i32) -> (i32, i32) {
    %c0_i32 = arith.constant 0 : i32
    %c0_i32_0 = arith.constant 0 : i32
    return %c0_i32, %arg0 : i32, i32
  }
  func.func @transform_1(%arg0: i32) -> (i32, i32) {
    %c0_i32 = arith.constant 0 : i32
    %c0_i32_0 = arith.constant 0 : i32
    return %c0_i32, %arg0 : i32, i32
  }
  func.func @transform_2(%arg0: i32) -> (i32, i32) {
    %c0_i32 = arith.constant 0 : i32
    %c0_i32_0 = arith.constant 0 : i32
    %c0_i32_1 = arith.constant 0 : i32
    return %c0_i32, %c0_i32_0 : i32, i32
  }
  func.func @transform_3(%arg0: i32) -> (i32, i32) {
    %c0_i32 = arith.constant 0 : i32
    %c0_i32_0 = arith.constant 0 : i32
    %c0_i32_1 = arith.constant 0 : i32
    return %c0_i32, %c0_i32_0 : i32, i32
  }
  func.func @transform_4(%arg0: i32) -> (i32, i32) {
    %c0_i32 = arith.constant 0 : i32
    %c0_i32_0 = arith.constant 0 : i32
    %c0_i32_1 = arith.constant 0 : i32
    return %c0_i32, %c0_i32_0 : i32, i32
  }
  func.func @transform_5(%arg0: i32) -> (i32, i32) {
    %c0_i32 = arith.constant 0 : i32
    %c0_i32_0 = arith.constant 0 : i32
    %c0_i32_1 = arith.constant 0 : i32
    return %c0_i32, %c0_i32_0 : i32, i32
  }
  func.func @transform_6(%arg0: i32) -> (i32, i32) {
    %c0_i32 = arith.constant 0 : i32
    %c0_i32_0 = arith.constant 0 : i32
    %c0_i32_1 = arith.constant 0 : i32
    return %c0_i32, %c0_i32_0 : i32, i32
  }
  func.func @transform_7(%arg0: i32) -> (i32, i32) {
    %c0_i32 = arith.constant 0 : i32
    %c0_i32_0 = arith.constant 0 : i32
    %c0_i32_1 = arith.constant 0 : i32
    return %c0_i32, %c0_i32_0 : i32, i32
  }
  func.func @transform_8(%arg0: i32) -> i32 {
    %c0_i32 = arith.constant 0 : i32
    %c0_i32_0 = arith.constant 0 : i32
    return %c0_i32 : i32
  }
  func.func @transform_9(%arg0: i32) -> (i32, i32) {
    %c0_i32 = arith.constant 0 : i32
    %c0_i32_0 = arith.constant 0 : i32
    return %c0_i32, %arg0 : i32, i32
  }
}

</mosaic_0001>

<bundles_post_ra>
// kernel: qnet_forward.1
= control target key start
LH: loop header
LB: loop body
LE: loop exit
PB: predicated region body
PF: predicated region fallthrough
CT: control target
= control target key end

     0   :  { %v2666_v0 = vmov 1   ;;  %v2667_v1 = vmov 0   ;;  %v2668_v20 = vmov 2   ;;  %s4966_s2 = inlined_call_operand.vmem [shape: f32[256,3], index: 2, kind: input, shape index: {}]   ;;  %s4967_s3 = inlined_call_operand.vmem [shape: f32[256,1], index: 3, kind: input, shape index: {}]   ;;  %s4968_s5 = inlined_call_operand.vmem [shape: f32[256,1], index: 5, kind: input, shape index: {}]   ;;  %s4969_s0 = inlined_call_operand.vmem [shape: f32[3,256], index: 0, kind: input, shape index: {}]   ;;  %s4970_s4 = inlined_call_operand.vmem [shape: bf16[256,256], index: 4, kind: input, shape index: {}]   ;;  %s4971_s6 = inlined_call_operand.vmem [shape: f32[256,1], index: 6, kind: input, shape index: {}]   ;;  %s4972_s7 = inlined_call_operand.vmem [shape: f32[256,1], index: 7, kind: input, shape index: {}]   ;;  %s4973_s1 = inlined_call_operand.vmem [shape: f32[1,256], index: 1, kind: input, shape index: {}]   ;;  %s4974_s8 = inlined_call_operand.<no memory space> [shape: f32[1], index: 8, kind: input, shape index: {}]   ;;  %s4975_s9 = inlined_call_operand.vmem [shape: f32[1,256], index: 9, kind: output, shape index: {}]  }
   0x1   :  { %2612 = vset.pattern.permute.xlu0 %v2666_v0  ;;  %2611 = vset.pattern.permute.xlu1 %v2667_v1  ;;  %v2724_v2 = vld [vmem:[%s4966_s2 + $0x10] sm:$0xff]  ;;  %v2729_v3 = vld [vmem:[%s4966_s2] sm:$0xff]  ;;  %v2736_v4 = vld [vmem:[%s4966_s2 + $0x18] sm:$0xff] }
   0x2   :  { %79 = vperm.xlu1 %2611, %v2724_v2   ;;  %311 = vperm.xlu0 %2612, %v2729_v3   ;;  %v2743_v5 = vld [vmem:[%s4966_s2 + $0x28] sm:$0xff]  ;;  %v2750_v6 = vld [vmem:[%s4966_s2 + $0x38] sm:$0xff]  ;;  %v39_v21 = vld [vmem:[%s4966_s2 + $0x20] sm:$0xff] }
   0x3   :  { %v2757_v7 = vld [vmem:[%s4966_s2 + $0x48] sm:$0xff]  ;;  %v2764_v8 = vld [vmem:[%s4966_s2 + $0x58] sm:$0xff]  ;;  %v41_v22 = vld [vmem:[%s4966_s2 + $0x30] sm:$0xff] }
   0x4   :  { %v2771_v9 = vld [vmem:[%s4966_s2 + $0x68] sm:$0xff]  ;;  %v2778_v10 = vld [vmem:[%s4966_s2 + $0x78] sm:$0xff]  ;;  %v43_v23 = vld [vmem:[%s4966_s2 + $0x40] sm:$0xff] }
   0x5   :  { %v2785_v11 = vld [vmem:[%s4966_s2 + $0x88] sm:$0xff]  ;;  %v2792_v12 = vld [vmem:[%s4966_s2 + $0x98] sm:$0xff]  ;;  %v45_v24 = vld [vmem:[%s4966_s2 + $0x50] sm:$0xff] }
   0x6   :  { %84 = vperm.xlu1 %2611, %v2736_v4   ;;  %323 = vperm.xlu0 %2612, %v2736_v4   ;;  %v2799_v13 = vld [vmem:[%s4966_s2 + $0xa8] sm:$0xff]  ;;  %v2806_v14 = vld [vmem:[%s4966_s2 + $0xb8] sm:$0xff]  ;;  %v47_v25 = vld [vmem:[%s4966_s2 + $0x60] sm:$0xff] }
   0x7   :  { %v2813_v15 = vld [vmem:[%s4966_s2 + $0xc8] sm:$0xff]  ;;  %v2820_v16 = vld [vmem:[%s4966_s2 + $0xd8] sm:$0xff]  ;;  %v49_v26 = vld [vmem:[%s4966_s2 + $0x70] sm:$0xff] }
   0x8   :  { %v2827_v17 = vld [vmem:[%s4966_s2 + $0xe8] sm:$0xff]  ;;  %v2834_v18 = vld [vmem:[%s4966_s2 + $0xf8] sm:$0xff]  ;;  %v51_v27 = vld [vmem:[%s4966_s2 + $0x80] sm:$0xff] }
   0x9   :  { %v36_v19 = vld [vmem:[%s4966_s2 + $0x8] sm:$0xff]  ;;  %v53_v28 = vld [vmem:[%s4966_s2 + $0x90] sm:$0xff]  ;;  %v55_v29 = vld [vmem:[%s4966_s2 + $0xa0] sm:$0xff] }
   0xa   :  { %94 = vperm.xlu1 %2611, %v2743_v5   ;;  %331 = vperm.xlu0 %2612, %v2743_v5   ;;  %v57_v30 = vld [vmem:[%s4966_s2 + $0xb0] sm:$0xff]  ;;  %v59_v31 = vld [vmem:[%s4966_s2 + $0xc0] sm:$0xff] }
   0xb   :  { %v2878_v32 = vld [vmem:[%s4966_s2 + $0xd0] sm:$0xff]  ;;  %v2884_v33 = vld [vmem:[%s4966_s2 + $0xe0] sm:$0xff] }
   0xc   :  { %v2891_v34 = vld [vmem:[%s4966_s2 + $0xf0] sm:$0xff] }
   0xe   :  { %104 = vperm.xlu1 %2611, %v2750_v6   ;;  %339 = vperm.xlu0 %2612, %v2750_v6  }
  0x12   :  { %114 = vperm.xlu1 %2611, %v2757_v7   ;;  %347 = vperm.xlu0 %2612, %v2757_v7  }
  0x16   :  { %124 = vperm.xlu1 %2611, %v2764_v8   ;;  %355 = vperm.xlu0 %2612, %v2764_v8  }
  0x1a   :  { %134 = vperm.xlu1 %2611, %v2771_v9   ;;  %363 = vperm.xlu0 %2612, %v2771_v9  }
  0x1e   :  { %144 = vperm.xlu1 %2611, %v2778_v10   ;;  %371 = vperm.xlu0 %2612, %v2778_v10  }
  0x22   :  { %154 = vperm.xlu1 %2611, %v2785_v11   ;;  %379 = vperm.xlu0 %2612, %v2785_v11  }
  0x26   :  { %164 = vperm.xlu1 %2611, %v2792_v12   ;;  %387 = vperm.xlu0 %2612, %v2792_v12  }
  0x2a   :  { %174 = vperm.xlu1 %2611, %v2799_v13   ;;  %395 = vperm.xlu0 %2612, %v2799_v13  }
  0x2e   :  { %184 = vperm.xlu1 %2611, %v2806_v14   ;;  %403 = vperm.xlu0 %2612, %v2806_v14  }
  0x32   :  { %194 = vperm.xlu1 %2611, %v2813_v15   ;;  %411 = vperm.xlu0 %2612, %v2813_v15  }
  0x36   :  { %204 = vperm.xlu1 %2611, %v2820_v16   ;;  %419 = vperm.xlu0 %2612, %v2820_v16  }
  0x3a   :  { %214 = vperm.xlu1 %2611, %v2827_v17   ;;  %427 = vperm.xlu0 %2612, %v2827_v17  }
  0x3e   :  { %224 = vperm.xlu1 %2611, %v2834_v18   ;;  %435 = vperm.xlu0 %2612, %v2834_v18  }
  0x42   :  { %2613 = vset.pattern.permute.xlu1 %v2666_v0  ;;  %2615 = vset.pattern.permute.xlu0 %v2668_v20 }
  0x43   :  { %315 = vperm.xlu1 %2613, %v36_v19   ;;  %589 = vperm.xlu0 %2615, %v36_v19  }
  0x47   :  { %319 = vperm.xlu1 %2613, %v2724_v2   ;;  %601 = vperm.xlu0 %2615, %v39_v21  }
  0x4b   :  { %327 = vperm.xlu1 %2613, %v39_v21   ;;  %609 = vperm.xlu0 %2615, %v41_v22  }
  0x4f   :  { %335 = vperm.xlu1 %2613, %v41_v22   ;;  %617 = vperm.xlu0 %2615, %v43_v23  }
  0x53   :  { %343 = vperm.xlu1 %2613, %v43_v23   ;;  %625 = vperm.xlu0 %2615, %v45_v24  }
  0x57   :  { %351 = vperm.xlu1 %2613, %v45_v24   ;;  %633 = vperm.xlu0 %2615, %v47_v25  }
  0x5b   :  { %359 = vperm.xlu1 %2613, %v47_v25   ;;  %641 = vperm.xlu0 %2615, %v49_v26  }
  0x5f   :  { %367 = vperm.xlu1 %2613, %v49_v26   ;;  %649 = vperm.xlu0 %2615, %v51_v27  }
  0x63   :  { %375 = vperm.xlu1 %2613, %v51_v27   ;;  %657 = vperm.xlu0 %2615, %v53_v28  }
  0x67   :  { %383 = vperm.xlu1 %2613, %v53_v28   ;;  %665 = vperm.xlu0 %2615, %v55_v29  }
  0x6b   :  { %391 = vperm.xlu1 %2613, %v55_v29   ;;  %673 = vperm.xlu0 %2615, %v57_v30  }
  0x6f   :  { %399 = vperm.xlu1 %2613, %v57_v30   ;;  %681 = vperm.xlu0 %2615, %v59_v31  }
  0x73   :  { %407 = vperm.xlu1 %2613, %v59_v31   ;;  %689 = vperm.xlu0 %2615, %v2878_v32  }
  0x77   :  { %415 = vperm.xlu1 %2613, %v2878_v32   ;;  %697 = vperm.xlu0 %2615, %v2884_v33  }
  0x7b   :  { %423 = vperm.xlu1 %2613, %v2884_v33   ;;  %705 = vperm.xlu0 %2615, %v2891_v34  }
  0x7f   :  { %431 = vperm.xlu1 %2613, %v2891_v34   ;;  %2616 = vset.pattern.permute.xlu0 %v2667_v1 }
  0x80   :  { %69 = vperm.xlu0 %2616, %v2729_v3  }
  0x81   :  { %v2898_v35 = vpop.permute.xlu1 %79  ;;  %v2900_v36 = vpop.permute.xlu0 %311 }
  0x83   :  { %2614 = vset.pattern.permute.xlu1 %v2668_v20 }
  0x84   :  { %585 = vperm.xlu1 %2614, %v2729_v3   ;;  %74 = vperm.xlu0 %2616, %v36_v19   ;;  %v869_v19 = vld [vmem:[%s4967_s3 + $0x58] sm:$0xff] }
  0x85   :  { %v2903_v37 = vpop.permute.xlu1 %84  ;;  %v2905_v38 = vpop.permute.xlu0 %323 }
  0x88   :  { %593 = vperm.xlu1 %2614, %v2724_v2   ;;  %89 = vperm.xlu0 %2616, %v39_v21  }
  0x89   :  { %v2908_v39 = vpop.permute.xlu1 %94  ;;  %v2910_v40 = vpop.permute.xlu0 %331 }
  0x8c   :  { %597 = vperm.xlu1 %2614, %v2736_v4   ;;  %99 = vperm.xlu0 %2616, %v41_v22   ;;  %v858_v4 = vld [vmem:[%s4967_s3] sm:$0xff]  ;;  %v864_v22 = vld [vmem:[%s4967_s3 + $0x30] sm:$0xff] }
  0x8d   :  { %v2913_v41 = vpop.permute.xlu1 %104  ;;  %v2915_v42 = vpop.permute.xlu0 %339 }
  0x90   :  { %605 = vperm.xlu1 %2614, %v2743_v5   ;;  %109 = vperm.xlu0 %2616, %v43_v23   ;;  %v861_v5 = vld [vmem:[%s4967_s3 + $0x18] sm:$0xff]  ;;  %v871_v23 = vld [vmem:[%s4967_s3 + $0x68] sm:$0xff] }
  0x91   :  { %v2918_v43 = vpop.permute.xlu1 %114  ;;  %v2920_v44 = vpop.permute.xlu0 %347 }
  0x94   :  { %613 = vperm.xlu1 %2614, %v2750_v6   ;;  %119 = vperm.xlu0 %2616, %v45_v24  }
  0x95   :  { %v2923_v45 = vpop.permute.xlu1 %124  ;;  %v2925_v46 = vpop.permute.xlu0 %355 }
  0x98   :  { %621 = vperm.xlu1 %2614, %v2757_v7   ;;  %129 = vperm.xlu0 %2616, %v47_v25  }
  0x99   :  { %v2928_v47 = vpop.permute.xlu1 %134  ;;  %v2930_v48 = vpop.permute.xlu0 %363 }
  0x9c   :  { %629 = vperm.xlu1 %2614, %v2764_v8   ;;  %139 = vperm.xlu0 %2616, %v49_v26   ;;  %v863_v8 = vld [vmem:[%s4967_s3 + $0x28] sm:$0xff]  ;;  %v866_v26 = vld [vmem:[%s4967_s3 + $0x40] sm:$0xff] }
  0x9d   :  { %v2933_v49 = vpop.permute.xlu1 %144  ;;  %v2935_v50 = vpop.permute.xlu0 %371 }
  0xa0   :  { %637 = vperm.xlu1 %2614, %v2771_v9   ;;  %149 = vperm.xlu0 %2616, %v51_v27   ;;  %v873_v27 = vld [vmem:[%s4967_s3 + $0x78] sm:$0xff] }
  0xa1   :  { %v2938_v51 = vpop.permute.xlu1 %154  ;;  %v2940_v52 = vpop.permute.xlu0 %379 }
  0xa4   :  { %645 = vperm.xlu1 %2614, %v2778_v10   ;;  %159 = vperm.xlu0 %2616, %v53_v28  }
  0xa5   :  { %v2943_v53 = vpop.permute.xlu1 %164  ;;  %v2945_v54 = vpop.permute.xlu0 %387 }
  0xa8   :  { %653 = vperm.xlu1 %2614, %v2785_v11   ;;  %169 = vperm.xlu0 %2616, %v55_v29   ;;  %v859_v11 = vld [vmem:[%s4967_s3 + $0x8] sm:$0xff] }
  0xa9   :  { %v2948_v55 = vpop.permute.xlu1 %174  ;;  %v2950_v56 = vpop.permute.xlu0 %395 }
  0xac   :  { %661 = vperm.xlu1 %2614, %v2792_v12   ;;  %179 = vperm.xlu0 %2616, %v57_v30   ;;  %v865_v12 = vld [vmem:[%s4967_s3 + $0x38] sm:$0xff]  ;;  %v868_v30 = vld [vmem:[%s4967_s3 + $0x50] sm:$0xff] }
  0xad   :  { %v2953_v57 = vpop.permute.xlu1 %184  ;;  %v2955_v58 = vpop.permute.xlu0 %403 }
  0xb0   :  { %669 = vperm.xlu1 %2614, %v2799_v13   ;;  %189 = vperm.xlu0 %2616, %v59_v31   ;;  %v875_v31 = vld [vmem:[%s4967_s3 + $0x88] sm:$0xff] }
  0xb1   :  { %v2958_v59 = vpop.permute.xlu1 %194  ;;  %v2960_v60 = vpop.permute.xlu0 %411 }
  0xb4   :  { %677 = vperm.xlu1 %2614, %v2806_v14   ;;  %199 = vperm.xlu0 %2616, %v2878_v32  }
  0xb5   :  { %v2964_v61 = vpop.permute.xlu1 %204  ;;  %v2966_v62 = vpop.permute.xlu0 %419 }
  0xb8   :  { %685 = vperm.xlu1 %2614, %v2813_v15   ;;  %209 = vperm.xlu0 %2616, %v2884_v33   ;;  %v860_v15 = vld [vmem:[%s4967_s3 + $0x10] sm:$0xff] }
  0xb9   :  { %v2970_v63 = vpop.permute.xlu1 %214  ;;  %v2972_v0 = vpop.permute.xlu0 %427 }
  0xbc   :  { %693 = vperm.xlu1 %2614, %v2820_v16   ;;  %219 = vperm.xlu0 %2616, %v2891_v34   ;;  %v870_v34 = vld [vmem:[%s4967_s3 + $0x60] sm:$0xff] }
  0xbd   :  { %v2976_v2 = vpop.permute.xlu1 %224  ;;  %v2978_v3 = vpop.permute.xlu0 %435 }
  0xc0   :  { %701 = vperm.xlu1 %2614, %v2827_v17   ;;  %892 = vperm.xlu0 %2616, %v858_v4   ;;  %v877_v4 = vld [vmem:[%s4967_s3 + $0x98] sm:$0xff] }
  0xc2   :  { %v2987_v6 = vpop.permute.xlu1 %315  ;;  %v2989_v7 = vpop.permute.xlu0 %589 }
  0xc4   :  { %709 = vperm.xlu1 %2614, %v2834_v18   ;;  %907 = vperm.xlu0 %2616, %v861_v5   ;;  %v862_v18 = vld [vmem:[%s4967_s3 + $0x20] sm:$0xff] }
  0xc6   :  { %v2995_v9 = vpop.permute.xlu1 %319  ;;  %v2997_v10 = vpop.permute.xlu0 %601 }
  0xc8   :  { %2617 = vset.pattern.permute.xlu1 %v2667_v1  ;;  %917 = vperm.xlu0 %2616, %v863_v8   ;;  %v867_v1 = vld [vmem:[%s4967_s3 + $0x48] sm:$0xff] }
  0xc9   :  { %897 = vperm.xlu1 %2617, %v859_v11   ;;  %v872_v11 = vld [vmem:[%s4967_s3 + $0x70] sm:$0xff] }
  0xca   :  { %v3006_v13 = vpop.permute.xlu1 %327  ;;  %v3008_v14 = vpop.permute.xlu0 %609 }
  0xcb   :  { %5058 = vst [vmem:[#allocation3_spill] sm:$0xff] %v3006_v13  ;;  %5059 = vst [vmem:[#allocation4_spill] sm:$0xff] %v3008_v14 }
  0xcc   :  { %927 = vperm.xlu0 %2616, %v865_v12   ;;  %v879_v12 = vld [vmem:[%s4967_s3 + $0xa8] sm:$0xff] }
  0xcd   :  { %902 = vperm.xlu1 %2617, %v860_v15  }
  0xce   :  { %v3016_v16 = vpop.permute.xlu1 %335  ;;  %v3018_v17 = vpop.permute.xlu0 %617 }
  0xcf   :  { %5060 = vst [vmem:[#allocation5_spill] sm:$0xff] %v3016_v16  ;;  %5061 = vst [vmem:[#allocation6_spill] sm:$0xff] %v3018_v17 }
  0xd0   :  { %937 = vperm.xlu0 %2616, %v867_v1  }
  0xd1   :  { %912 = vperm.xlu1 %2617, %v862_v18   ;;  %v874_v18 = vld [vmem:[%s4967_s3 + $0x80] sm:$0xff] }
  0xd2   :  { %v3026_v20 = vpop.permute.xlu1 %343  ;;  %v3028_v21 = vpop.permute.xlu0 %625 }
  0xd3   :  { %5062 = vst [vmem:[#allocation7_spill] sm:$0xff] %v3026_v20  ;;  %5063 = vst [vmem:[#allocation8_spill] sm:$0xff] %v3028_v21 }
  0xd4   :  { %947 = vperm.xlu0 %2616, %v869_v19   ;;  %v881_v19 = vld [vmem:[%s4967_s3 + $0xb8] sm:$0xff] }
  0xd5   :  { %922 = vperm.xlu1 %2617, %v864_v22  }
  0xd6   :  { %v3036_v24 = vpop.permute.xlu1 %351  ;;  %v3038_v25 = vpop.permute.xlu0 %633 }
  0xd7   :  { %5064 = vst [vmem:[#allocation9_spill] sm:$0xff] %v3036_v24  ;;  %5065 = vst [vmem:[#allocation10_spill] sm:$0xff] %v3038_v25 }
  0xd8   :  { %957 = vperm.xlu0 %2616, %v871_v23  }
  0xd9   :  { %932 = vperm.xlu1 %2617, %v866_v26   ;;  %v876_v26 = vld [vmem:[%s4967_s3 + $0x90] sm:$0xff] }
  0xda   :  { %v3046_v28 = vpop.permute.xlu1 %359  ;;  %v3048_v29 = vpop.permute.xlu0 %641 }
  0xdb   :  { %5066 = vst [vmem:[#allocation11_spill] sm:$0xff] %v3046_v28  ;;  %5067 = vst [vmem:[#allocation12_spill] sm:$0xff] %v3048_v29 }
  0xdc   :  { %967 = vperm.xlu0 %2616, %v873_v27   ;;  %v883_v27 = vld [vmem:[%s4967_s3 + $0xc8] sm:$0xff] }
  0xdd   :  { %942 = vperm.xlu1 %2617, %v868_v30  }
  0xde   :  { %v3056_v32 = vpop.permute.xlu1 %367  ;;  %v3058_v33 = vpop.permute.xlu0 %649 }
  0xdf   :  { %5068 = vst [vmem:[#allocation13_spill] sm:$0xff] %v3056_v32  ;;  %5069 = vst [vmem:[#allocation14_spill] sm:$0xff] %v3058_v33 }
  0xe0   :  { %977 = vperm.xlu0 %2616, %v875_v31  }
  0xe1   :  { %952 = vperm.xlu1 %2617, %v870_v34   ;;  %v878_v34 = vld [vmem:[%s4967_s3 + $0xa0] sm:$0xff] }
  0xe2   :  { %v3066_v5 = vpop.permute.xlu1 %375  ;;  %v3068_v8 = vpop.permute.xlu0 %657 }
  0xe3   :  { %5070 = vst [vmem:[#allocation15_spill] sm:$0xff] %v3066_v5  ;;  %5071 = vst [vmem:[#allocation16_spill] sm:$0xff] %v3068_v8 }
  0xe4   :  { %987 = vperm.xlu0 %2616, %v877_v4   ;;  %v885_v4 = vld [vmem:[%s4967_s3 + $0xd8] sm:$0xff] }
  0xe5   :  { %962 = vperm.xlu1 %2617, %v872_v11  }
  0xe6   :  { %v3076_v15 = vpop.permute.xlu1 %383  ;;  %v3078_v1 = vpop.permute.xlu0 %665 }
  0xe7   :  { %5072 = vst [vmem:[#allocation17_spill] sm:$0xff] %v3076_v15  ;;  %5073 = vst [vmem:[#allocation18_spill] sm:$0xff] %v3078_v1 }
  0xe8   :  { %997 = vperm.xlu0 %2616, %v879_v12  }
  0xe9   :  { %972 = vperm.xlu1 %2617, %v874_v18   ;;  %v880_v18 = vld [vmem:[%s4967_s3 + $0xb0] sm:$0xff] }
  0xea   :  { %v3086_v22 = vpop.permute.xlu1 %391  ;;  %v3088_v23 = vpop.permute.xlu0 %673 }
  0xeb   :  { %5074 = vst [vmem:[#allocation19_spill] sm:$0xff] %v3086_v22  ;;  %5075 = vst [vmem:[#allocation20_spill] sm:$0xff] %v3088_v23 }
  0xec   :  { %1007 = vperm.xlu0 %2616, %v881_v19   ;;  %v887_v19 = vld [vmem:[%s4967_s3 + $0xe8] sm:$0xff] }
  0xed   :  { %982 = vperm.xlu1 %2617, %v876_v26  }
  0xee   :  { %v3096_v30 = vpop.permute.xlu1 %399  ;;  %v3098_v31 = vpop.permute.xlu0 %681 }
  0xef   :  { %5076 = vst [vmem:[#allocation21_spill] sm:$0xff] %v3096_v30  ;;  %5077 = vst [vmem:[#allocation22_spill] sm:$0xff] %v3098_v31 }
  0xf0   :  { %1017 = vperm.xlu0 %2616, %v883_v27  }
  0xf1   :  { %992 = vperm.xlu1 %2617, %v878_v34   ;;  %v882_v34 = vld [vmem:[%s4967_s3 + $0xc0] sm:$0xff] }
  0xf2   :  { %v3106_v11 = vpop.permute.xlu1 %407  ;;  %v3108_v12 = vpop.permute.xlu0 %689 }
  0xf3   :  { %5078 = vst [vmem:[#allocation23_spill] sm:$0xff] %v3106_v11  ;;  %5079 = vst [vmem:[#allocation24_spill] sm:$0xff] %v3108_v12  ;;  %v4984_v11 = vlaneseq }
  0xf4   :  { %1027 = vperm.xlu0 %2616, %v885_v4   ;;  %v889_v4 = vld [vmem:[%s4967_s3 + $0xf8] sm:$0xff] }
  0xf5   :  { %1002 = vperm.xlu1 %2617, %v880_v18  }
  0xf6   :  { %v3116_v26 = vpop.permute.xlu1 %415  ;;  %v3118_v27 = vpop.permute.xlu0 %697 }
  0xf7   :  { %5080 = vst [vmem:[#allocation25_spill] sm:$0xff] %v3116_v26  ;;  %5081 = vst [vmem:[#allocation26_spill] sm:$0xff] %v3118_v27  ;;  %v884_v26 = vld [vmem:[%s4967_s3 + $0xd0] sm:$0xff]  ;;  %v3134_v27 = vshrl.u32 %v4984_v11, 7  ;;  %v33_v11 = vld [vmem:[%s4969_s0] sm:$0x77] }
  0xf8   :  { %1037 = vperm.xlu0 %2616, %v887_v19   ;;  %v1243_v19 = vld [vmem:[%s4968_s5 + $0x8] sm:$0xff] }
  0xf9   :  { %1012 = vperm.xlu1 %2617, %v882_v34   ;;  %5084 = vst [vmem:[#allocation29_spill] sm:$0xff] %v3134_v27  ;;  %v3140_v34 = vsub.s32 1, %v3134_v27  ;;  %v718_v5 = vsub.s32 6, %v3134_v27 }
  0xfa   :  { %v3126_v18 = vpop.permute.xlu1 %423  ;;  %v3128_v12 = vpop.permute.xlu0 %705 }
  0xfb   :  { %5082 = vst [vmem:[#allocation27_spill] sm:$0xff] %v3126_v18  ;;  %5083 = vst [vmem:[#allocation28_spill] sm:$0xff] %v3128_v12  ;;  %v444_v18 = vsub.s32 5, %v3134_v27  ;;  %v886_v12 = vld [vmem:[%s4967_s3 + $0xe0] sm:$0xff]  ;;  %v441_v23 = vrot.slane %v33_v11, %v3140_v34 }
  0xfc   :  { %1047 = vperm.xlu0 %2616, %v889_v4   ;;  %5085 = vst [vmem:[#allocation30_spill] sm:$0xff] %v3140_v34  ;;  %v3151_v4 = vsub.s32 0, %v3134_v27 }
  0xfd   :  { %1022 = vperm.xlu1 %2617, %v884_v26   ;;  %v234_v26 = vsub.s32 4, %v3134_v27  ;;  %v445_v22 = vrot.slane %v33_v11, %v444_v18  ;;  %v1247_v18 = vld [vmem:[%s4968_s5 + $0x28] sm:$0xff]  ;;  %v3175_v33 = vrot.slane %v441_v23, %v3140_v34  ;;  %v719_v23 = vrot.slane %v33_v11, %v718_v5  ;;  %v1244_v5 = vld [vmem:[%s4968_s5 + $0x10] sm:$0xff] }
  0xfe   :  { %v3143_v31 = vpop.permute.xlu1 %431  ;;  %5088 = vst [vmem:[#allocation33_spill] sm:$0xff] %v3151_v4 }
  0xff   :  { %5086 = vst [vmem:[#allocation31_spill] sm:$0xff] %v3143_v31  ;;  %v3148_v30 = vpop.permute.xlu0 %69  ;;  %v1245_v31 = vld [vmem:[%s4968_s5 + $0x18] sm:$0xff]  ;;  %v235_v8 = vrot.slane %v33_v11, %v234_v26  ;;  %v1242_v26 = vld [vmem:[%s4968_s5] sm:$0xff]  ;;  %v3229_v28 = vmul.f32 %v3175_v33, %v2900_v36  ;;  %v494_v21 = vmul.f32 %v3175_v33, %v2945_v54 }
 0x100   :  { %5087 = vst [vmem:[#allocation32_spill] sm:$0xff] %v3148_v30  ;;  %1281 = vperm.xlu0 %2616, %v1243_v19   ;;  %v888_v30 = vld [vmem:[%s4967_s3 + $0xf0] sm:$0xff]  ;;  %v231_v19 = vrot.slane %v33_v11, %v3151_v4 }
 0x101   :  { %1032 = vperm.xlu1 %2617, %v886_v12   ;;  %v714_v12 = vsub.s32 2, %v3134_v27  ;;  %5095 = vst [vmem:[#allocation40_spill] sm:$0xff] %v3229_v28 }
 0x103   :  { %v3164_v1 = vpop.permute.xlu1 %585  ;;  %v3166_v15 = vpop.permute.xlu0 %74  ;;  %v715_v27 = vrot.slane %v33_v11, %v714_v12 }
 0x104   :  { %5089 = vst [vmem:[#allocation34_spill] sm:$0xff] %v3164_v1  ;;  %5090 = vst [vmem:[#allocation35_spill] sm:$0xff] %v3166_v15  ;;  %1291 = vperm.xlu0 %2616, %v1245_v31   ;;  %v3178_v1 = vrot.slane %v445_v22, %v3140_v34  ;;  %v3191_v31 = vrot.slane %v235_v8, %v3151_v4  ;;  %v1249_v22 = vld [vmem:[%s4968_s5 + $0x38] sm:$0xff] }
 0x105   :  { %1042 = vperm.xlu1 %2617, %v888_v30   ;;  %v3188_v30 = vrot.slane %v231_v19, %v3151_v4  ;;  %v462_v19 = vmul.f32 %v3175_v33, %v2905_v38 }
 0x106   :  { %v463_v8 = vmul.f32 %v3178_v1, %v2905_v38  ;;  %v3225_v29 = vmul.f32 %v3191_v31, %v2898_v35  ;;  %v277_v28 = vmul.f32 %v3191_v31, %v2933_v49 }
 0x107   :  { %v3183_v15 = vpop.permute.xlu1 %593  ;;  %v3185_v32 = vpop.permute.xlu0 %89  ;;  %v252_v34 = vmul.f32 %v3188_v30, %v2903_v37  ;;  %v256_v11 = vmul.f32 %v3188_v30, %v2908_v39  ;;  %v3221_v38 = vmul.f32 %v3188_v30, %v2898_v35  ;;  %v257_v35 = vmul.f32 %v3191_v31, %v2908_v39 }
 0x108   :  { %5091 = vst [vmem:[#allocation36_spill] sm:$0xff] %v3183_v15  ;;  %5092 = vst [vmem:[#allocation37_spill] sm:$0xff] %v3185_v32  ;;  %1301 = vperm.xlu0 %2616, %v1247_v18   ;;  %v253_v15 = vmul.f32 %v3191_v31, %v2903_v37  ;;  %v466_v18 = vmul.f32 %v3175_v33, %v2910_v40  ;;  %v3215_v37 = vrot.slane %v715_v27, %v714_v12  ;;  %v1251_v27 = vld [vmem:[%s4968_s5 + $0x48] sm:$0xff] }
 0x109   :  { %1276 = vperm.xlu1 %2617, %v1242_v26   ;;  %v3217_v32 = vrot.slane %v719_v23, %v714_v12  ;;  %v3238_v12 = vadd.f32 %v462_v19, %v252_v34  ;;  %v261_v34 = vmul.f32 %v3191_v31, %v2913_v41  ;;  %v470_v39 = vmul.f32 %v3175_v33, %v2915_v42 }
 0x10a   :  { %v3240_v23 = vadd.f32 %v463_v8, %v253_v15  ;;  %v260_v15 = vmul.f32 %v3188_v30, %v2913_v41  ;;  %v2623_v8 = vld [vmem:[%s4970_s4 + $0x84] ss:$8 sps:$4 sm:$0xff]   ;;  %v265_v41 = vmul.f32 %v3191_v31, %v2918_v43  ;;  %v280_v24 = vmul.f32 %v3188_v30, %v2938_v51 }
 0x10b   :  { %v3211_v26 = vpop.permute.xlu1 %597  ;;  %v3213_v4 = vpop.permute.xlu0 %99  ;;  %5097 = vst [vmem:[#allocation42_spill] sm:$0xff] %v3238_v12  ;;  %v475_v12 = vmul.f32 %v3178_v1, %v2920_v44  ;;  %1781 = vmatprep.mubr.bf16.mxu1 %v2623_v8  ;;  %v487_v8 = vmul.f32 %v3178_v1, %v2935_v50 }
 0x10c   :  { %5093 = vst [vmem:[#allocation38_spill] sm:$0xff] %v3211_v26  ;;  %5094 = vst [vmem:[#allocation39_spill] sm:$0xff] %v3213_v4  ;;  %1311 = vperm.xlu0 %2616, %v1249_v22   ;;  %v3233_v26 = vmul.f32 %v3178_v1, %v2900_v36  ;;  %v467_v22 = vmul.f32 %v3178_v1, %v2910_v40  ;;  %v1246_v36 = vld [vmem:[%s4968_s5 + $0x20] sm:$0xff]  ;;  %v3252_v4 = vadd.f32 %v466_v18, %v256_v11 }
 0x10d   :  { %1286 = vperm.xlu1 %2617, %v1244_v5   ;;  %5098 = vst [vmem:[#allocation43_spill] sm:$0xff] %v3240_v23  ;;  %v2620_v5 = vld [vmem:[%s4970_s4 + $0x4] ss:$8 sps:$4 sm:$0xff]   ;;  %v471_v11 = vmul.f32 %v3178_v1, %v2915_v42  ;;  %v264_v18 = vmul.f32 %v3188_v30, %v2918_v43  ;;  %v1253_v23 = vld [vmem:[%s4968_s5 + $0x58] sm:$0xff]  ;;  %v268_v42 = vmul.f32 %v3188_v30, %v2923_v45  ;;  %v1248_v43 = vld [vmem:[%s4968_s5 + $0x30] sm:$0xff] }
 0x10e   :  { %5096 = vst [vmem:[#allocation41_spill] sm:$0xff] %v3233_v26  ;;  %5099 = vst [vmem:[#allocation44_spill] sm:$0xff] %v3252_v4  ;;  %v474_v4 = vmul.f32 %v3175_v33, %v2920_v44  ;;  %1701 = vmatprep.mubr.bf16.mxu0 %v2620_v5  ;;  %v272_v44 = vmul.f32 %v3188_v30, %v2928_v47  ;;  %v273_v26 = vmul.f32 %v3191_v31, %v2928_v47 }
 0x10f   :  { %v3260_v40 = vpop.permute.xlu1 %605  ;;  %v3262_v19 = vpop.permute.xlu0 %109  ;;  %v276_v5 = vmul.f32 %v3188_v30, %v2933_v49  ;;  %v486_v47 = vmul.f32 %v3175_v33, %v2935_v50  ;;  %v281_v49 = vmul.f32 %v3191_v31, %v2938_v51  ;;  %v1255_v50 = vld [vmem:[%s4968_s5 + $0x68] sm:$0xff]  ;;  %v3326_v20 = vadd.f32 %v467_v22, %v257_v35 }
 0x110   :  { %5100 = vst [vmem:[#allocation45_spill] sm:$0xff] %v3260_v40  ;;  %5101 = vst [vmem:[#allocation46_spill] sm:$0xff] %v3262_v19  ;;  %1321 = vperm.xlu0 %2616, %v1251_v27   ;;  %v269_v40 = vmul.f32 %v3191_v31, %v2923_v45  ;;  %v478_v27 = vmul.f32 %v3175_v33, %v2925_v46  ;;  %v479_v19 = vmul.f32 %v3178_v1, %v2925_v46 }
 0x111   :  { %1296 = vperm.xlu1 %2617, %v1246_v36   ;;  %v482_v45 = vmul.f32 %v3175_v33, %v2930_v48  ;;  %v483_v36 = vmul.f32 %v3178_v1, %v2930_v48  ;;  %v490_v48 = vmul.f32 %v3175_v33, %v2940_v52  ;;  %v3330_v17 = vadd.f32 %v471_v11, %v261_v34 }
 0x112   :  { %v3332_v51 = vadd.f32 %v474_v4, %v264_v18  ;;  %v3337_v16 = vadd.f32 %v475_v12, %v265_v41  ;;  %v3339_v14 = vadd.f32 %v478_v27, %v268_v42  ;;  %v3351_v4 = vadd.f32 %v486_v47, %v276_v5  ;;  %v1257_v12 = vld [vmem:[%s4968_s5 + $0x78] sm:$0xff] }
 0x113   :  { %v3303_v46 = vpop.permute.xlu1 %613  ;;  %v3305_v25 = vpop.permute.xlu0 %119  ;;  %v3343_v13 = vadd.f32 %v482_v45, %v272_v44  ;;  %v3353_v34 = vadd.f32 %v487_v8, %v277_v28  ;;  %v288_v28 = vmul.f32 %v3188_v30, %v2948_v55  ;;  %v289_v18 = vmul.f32 %v3191_v31, %v2948_v55 }
 0x114   :  { %5102 = vst [vmem:[#allocation47_spill] sm:$0xff] %v3303_v46  ;;  %5103 = vst [vmem:[#allocation48_spill] sm:$0xff] %v3305_v25  ;;  %1331 = vperm.xlu0 %2616, %v1253_v23   ;;  %v491_v46 = vmul.f32 %v3178_v1, %v2940_v52  ;;  %v284_v25 = vmul.f32 %v3188_v30, %v2943_v53  ;;  %v3328_v23 = vadd.f32 %v470_v39, %v260_v15  ;;  %v1250_v52 = vld [vmem:[%s4968_s5 + $0x40] sm:$0xff] }
 0x115   :  { %1306 = vperm.xlu1 %2617, %v1248_v43   ;;  %5104 = vst [vmem:[#allocation49_spill] sm:$0xff] %v3337_v16  ;;  %5105 = vst [vmem:[#allocation50_spill] sm:$0xff] %v3339_v14  ;;  %v3341_v43 = vadd.f32 %v479_v19, %v269_v40  ;;  %v3349_v15 = vadd.f32 %v483_v36, %v273_v26  ;;  %v3355_v39 = vadd.f32 %v490_v48, %v280_v24  ;;  %v1252_v24 = vld [vmem:[%s4968_s5 + $0x50] sm:$0xff] }
 0x116   :  { %5107 = vst [vmem:[#allocation52_spill] sm:$0xff] %v3343_v13  ;;  %5109 = vst [vmem:[#allocation54_spill] sm:$0xff] %v3351_v4  ;;  %v3360_v40 = vadd.f32 %v491_v46, %v281_v49  ;;  %v285_v19 = vmul.f32 %v3191_v31, %v2943_v53  ;;  %v495_v26 = vmul.f32 %v3178_v1, %v2945_v54  ;;  %v5154_v4 = vld [vmem:[#allocation16_spill] sm:$0xff]  ;;  %v5194_v14 = vld [vmem:[#allocation37_spill] sm:$0xff] }
 0x117   :  { %5106 = vst [vmem:[#allocation51_spill] sm:$0xff] %v3341_v43  ;;  %v3345_v35 = vpop.permute.xlu1 %621  ;;  %v3347_v22 = vpop.permute.xlu0 %129  ;;  %5108 = vst [vmem:[#allocation53_spill] sm:$0xff] %v3349_v15  ;;  %v3366_v11 = vadd.f32 %v494_v21, %v284_v25  ;;  %v498_v41 = vmul.f32 %v3175_v33, %v2950_v56  ;;  %v499_v53 = vmul.f32 %v3178_v1, %v2950_v56  ;;  %v5163_v15 = vld [vmem:[#allocation19_spill] sm:$0xff]  ;;  %v5193_v43 = vld [vmem:[#allocation34_spill] sm:$0xff] }
 0x118   :  { %5110 = vst [vmem:[#allocation55_spill] sm:$0xff] %v3353_v34  ;;  %5111 = vst [vmem:[#allocation56_spill] sm:$0xff] %v3355_v39  ;;  %1341 = vperm.xlu0 %2616, %v1255_v50   ;;  %v292_v54 = vmul.f32 %v3188_v30, %v2953_v57  ;;  %v293_v21 = vmul.f32 %v3191_v31, %v2953_v57  ;;  %v502_v25 = vmul.f32 %v3175_v33, %v2955_v58 }
 0x119   :  { %5112 = vst [vmem:[#allocation57_spill] sm:$0xff] %v3360_v40  ;;  %5113 = vst [vmem:[#allocation58_spill] sm:$0xff] %v3366_v11  ;;  %1316 = vperm.xlu1 %2617, %v1250_v52   ;;  %v503_v42 = vmul.f32 %v3178_v1, %v2955_v58  ;;  %v296_v44 = vmul.f32 %v3188_v30, %v2958_v59  ;;  %v297_v56 = vmul.f32 %v3191_v31, %v2958_v59  ;;  %v1259_v59 = vld [vmem:[%s4968_s5 + $0x88] sm:$0xff] }
 0x11a   :  { %v506_v45 = vmul.f32 %v3175_v33, %v2960_v60  ;;  %v507_v57 = vmul.f32 %v3178_v1, %v2960_v60  ;;  %v300_v58 = vmul.f32 %v3188_v30, %v2964_v61  ;;  %v301_v36 = vmul.f32 %v3191_v31, %v2964_v61 }
 0x11b   :  { %v3387_v27 = vpop.permute.xlu1 %629  ;;  %v3389_v55 = vpop.permute.xlu0 %139  ;;  %v510_v5 = vmul.f32 %v3175_v33, %v2966_v62  ;;  %v511_v46 = vmul.f32 %v3178_v1, %v2966_v62  ;;  %v304_v60 = vmul.f32 %v3188_v30, %v2970_v63  ;;  %v305_v47 = vmul.f32 %v3191_v31, %v2970_v63  ;;  %v1254_v62 = vld [vmem:[%s4968_s5 + $0x60] sm:$0xff] }
 0x11c   :  { %1351 = vperm.xlu0 %2616, %v1257_v12   ;;  %v514_v61 = vmul.f32 %v3175_v33, %v2972_v0  ;;  %v515_v8 = vmul.f32 %v3178_v1, %v2972_v0  ;;  %v308_v48 = vmul.f32 %v3188_v30, %v2976_v2  ;;  %v309_v49 = vmul.f32 %v3191_v31, %v2976_v2 }
 0x11d   :  { %1326 = vperm.xlu1 %2617, %v1252_v24   ;;  %v518_v50 = vmul.f32 %v3175_v33, %v2978_v3  ;;  %v519_v63 = vmul.f32 %v3178_v1, %v2978_v3  ;;  %v3433_v0 = vadd.f32 %v495_v26, %v285_v19  ;;  %v3435_v24 = vadd.f32 %v498_v41, %v288_v28  ;;  %v1261_v19 = vld [vmem:[%s4968_s5 + $0x98] sm:$0xff] }
 0x11e   :  { %v3437_v11 = vadd.f32 %v499_v53, %v289_v18  ;;  %v3439_v40 = vadd.f32 %v502_v25, %v292_v54  ;;  %v3441_v2 = vadd.f32 %v503_v42, %v293_v21  ;;  %v3443_v39 = vadd.f32 %v506_v45, %v296_v44  ;;  %v1256_v53 = vld [vmem:[%s4968_s5 + $0x70] sm:$0xff] }
 0x11f   :  { %v3429_v52 = vpop.permute.xlu1 %637  ;;  %v3431_v12 = vpop.permute.xlu0 %149  ;;  %5114 = vst [vmem:[#allocation59_spill] sm:$0xff] %v3433_v0  ;;  %5115 = vst [vmem:[#allocation60_spill] sm:$0xff] %v3435_v24  ;;  %v460_v3 = vmul.f32 %v3175_v33, %v2995_v9  ;;  %v461_v34 = vmul.f32 %v3178_v1, %v2995_v9  ;;  %v3452_v26 = vadd.f32 %v507_v57, %v297_v56  ;;  %v5149_v24 = vld [vmem:[#allocation15_spill] sm:$0xff] }
 0x120   :  { %5116 = vst [vmem:[#allocation61_spill] sm:$0xff] %v3437_v11  ;;  %5117 = vst [vmem:[#allocation62_spill] sm:$0xff] %v3439_v40  ;;  %1361 = vperm.xlu0 %2616, %v1259_v59   ;;  %v3454_v28 = vadd.f32 %v510_v5, %v300_v58  ;;  %v3456_v18 = vadd.f32 %v511_v46, %v301_v36  ;;  %v3458_v41 = vadd.f32 %v514_v61, %v304_v60  ;;  %v5129_v46 = vld [vmem:[#allocation3_spill] sm:$0xff]  ;;  %v5130_v60 = vld [vmem:[#allocation4_spill] sm:$0xff] }
 0x121   :  { %5118 = vst [vmem:[#allocation63_spill] sm:$0xff] %v3441_v2  ;;  %5119 = vst [vmem:[#allocation64_spill] sm:$0xff] %v3443_v39  ;;  %1336 = vperm.xlu1 %2617, %v1254_v62   ;;  %v3463_v54 = vadd.f32 %v515_v8, %v305_v47  ;;  %v3465_v9 = vadd.f32 %v518_v50, %v308_v48  ;;  %v3467_v21 = vadd.f32 %v519_v63, %v309_v49  ;;  %v1258_v61 = vld [vmem:[%s4968_s5 + $0x80] sm:$0xff]  ;;  %v5132_v62 = vld [vmem:[#allocation6_spill] sm:$0xff] }
 0x122   :  { %5120 = vst [vmem:[#allocation65_spill] sm:$0xff] %v3452_v26  ;;  %5121 = vst [vmem:[#allocation66_spill] sm:$0xff] %v3454_v28  ;;  %v3471_v25 = vmul.f32 %v3175_v33, %v2987_v6  ;;  %v3479_v56 = vmul.f32 %v3178_v1, %v2987_v6  ;;  %v3483_v45 = vmul.f32 %v3215_v37, %v2989_v7  ;;  %v5133_v50 = vld [vmem:[#allocation7_spill] sm:$0xff]  ;;  %v5145_v39 = vld [vmem:[#allocation13_spill] sm:$0xff] }
 0x123   :  { %5122 = vst [vmem:[#allocation67_spill] sm:$0xff] %v3456_v18  ;;  %5123 = vst [vmem:[#allocation68_spill] sm:$0xff] %v3458_v41  ;;  %v3473_v42 = vpop.permute.xlu1 %645  ;;  %v3475_v44 = vpop.permute.xlu0 %159  ;;  %v3487_v57 = vmul.f32 %v3217_v32, %v2989_v7  ;;  %v3491_v58 = vmul.f32 %v3215_v37, %v2997_v10  ;;  %v3494_v36 = vadd.f32 %v460_v3, %v3221_v38  ;;  %v1263_v7 = vld [vmem:[%s4968_s5 + $0xa8] sm:$0xff]  ;;  %v5138_v41 = vld [vmem:[#allocation10_spill] sm:$0xff] }
 0x124   :  { %5124 = vst [vmem:[#allocation69_spill] sm:$0xff] %v3463_v54  ;;  %5125 = vst [vmem:[#allocation70_spill] sm:$0xff] %v3465_v9  ;;  %1371 = vperm.xlu0 %2616, %v1261_v19   ;;  %v3497_v5 = vadd.f32 %v461_v34, %v3225_v29  ;;  %v3501_v6 = vmul.f32 %v3217_v32, %v2997_v10  ;;  %v3505_v59 = vmul.f32 %v3175_v33, %v5129_v46  ;;  %v5131_v34 = vld [vmem:[#allocation5_spill] sm:$0xff]  ;;  %v5141_v28 = vld [vmem:[#allocation11_spill] sm:$0xff] }
 0x125   :  { %5126 = vst [vmem:[#allocation71_spill] sm:$0xff] %v3467_v21  ;;  %5127 = vst [vmem:[#allocation72_spill] sm:$0xff] %v3473_v42  ;;  %1346 = vperm.xlu1 %2617, %v1256_v53   ;;  %v3512_v38 = vmul.f32 %v3178_v1, %v5129_v46  ;;  %v3516_v29 = vmul.f32 %v3215_v37, %v5130_v60  ;;  %v3520_v10 = vmul.f32 %v3217_v32, %v5130_v60  ;;  %v5136_v46 = vld [vmem:[#allocation8_spill] sm:$0xff]  ;;  %v5146_v40 = vld [vmem:[#allocation14_spill] sm:$0xff] }
 0x126   :  { %5128 = vst [vmem:[#allocation73_spill] sm:$0xff] %v3475_v44  ;;  %v3524_v47 = vmul.f32 %v3175_v33, %v5131_v34  ;;  %v3531_v8 = vmul.f32 %v3178_v1, %v5131_v34  ;;  %v3535_v48 = vmul.f32 %v3215_v37, %v5132_v62  ;;  %v3539_v49 = vmul.f32 %v3217_v32, %v5132_v62  ;;  %v5137_v62 = vld [vmem:[#allocation9_spill] sm:$0xff]  ;;  %v5142_v18 = vld [vmem:[#allocation12_spill] sm:$0xff] }
 0x127   :  { %v3543_v63 = vmul.f32 %v3175_v33, %v5133_v50  ;;  %v3545_v3 = vpop.permute.xlu1 %653  ;;  %v3547_v19 = vpop.permute.xlu0 %169  ;;  %v3551_v53 = vmul.f32 %v3178_v1, %v5133_v50  ;;  %v3555_v60 = vmul.f32 %v3215_v37, %v5136_v46  ;;  %v3559_v34 = vmul.f32 %v3217_v32, %v5136_v46  ;;  %v5197_v42 = vld [vmem:[#allocation28_spill] sm:$0xff] }
 0x128   :  { %5134 = vst [vmem:[#allocation3_spill] sm:$0xff] %v3545_v3  ;;  %5135 = vst [vmem:[#allocation4_spill] sm:$0xff] %v3547_v19  ;;  %v3563_v9 = vmul.f32 %v3175_v33, %v5137_v62  ;;  %1381 = vperm.xlu0 %2616, %v1263_v7   ;;  %v3567_v21 = vmul.f32 %v3178_v1, %v5137_v62  ;;  %v3571_v50 = vmul.f32 %v3215_v37, %v5138_v41  ;;  %v1265_v7 = vld [vmem:[%s4968_s5 + $0xb8] sm:$0xff] }
 0x129   :  { %v3575_v54 = vmul.f32 %v3217_v32, %v5138_v41  ;;  %v3579_v46 = vmul.f32 %v3175_v33, %v5141_v28  ;;  %1356 = vperm.xlu1 %2617, %v1258_v61   ;;  %v3586_v62 = vmul.f32 %v3178_v1, %v5141_v28  ;;  %v3590_v26 = vmul.f32 %v3215_v37, %v5142_v18  ;;  %v1260_v61 = vld [vmem:[%s4968_s5 + $0x90] sm:$0xff] }
 0x12a   :  { %5139 = vst [vmem:[#allocation5_spill] sm:$0xff] %v3571_v50  ;;  %v3594_v41 = vmul.f32 %v3217_v32, %v5142_v18  ;;  %v3598_v2 = vmul.f32 %v3175_v33, %v5145_v39  ;;  %v3605_v28 = vmul.f32 %v3178_v1, %v5145_v39  ;;  %v3609_v11 = vmul.f32 %v3215_v37, %v5146_v40  ;;  %v5199_v50 = vld [vmem:[#allocation40_spill] sm:$0xff] }
 0x12b   :  { %5140 = vst [vmem:[#allocation6_spill] sm:$0xff] %v3575_v54  ;;  %5143 = vst [vmem:[#allocation7_spill] sm:$0xff] %v3590_v26  ;;  %v3613_v18 = vmul.f32 %v3217_v32, %v5146_v40  ;;  %v3617_v0 = vmul.f32 %v3175_v33, %v5149_v24  ;;  %v3619_v3 = vpop.permute.xlu1 %661  ;;  %v3621_v19 = vpop.permute.xlu0 %179  ;;  %v3625_v39 = vmul.f32 %v3178_v1, %v5149_v24  ;;  %v5191_v26 = vld [vmem:[#allocation27_spill] sm:$0xff] }
 0x12c   :  { %5144 = vst [vmem:[#allocation8_spill] sm:$0xff] %v3594_v41  ;;  %5147 = vst [vmem:[#allocation9_spill] sm:$0xff] %v3609_v11  ;;  %v3629_v41 = vmul.f32 %v3215_v37, %v5154_v4  ;;  %v3633_v40 = vmul.f32 %v3217_v32, %v5154_v4  ;;  %1391 = vperm.xlu0 %2616, %v1265_v7   ;;  %v3653_v4 = vmul.f32 %v3175_v33, %v5163_v15  ;;  %v1267_v7 = vld [vmem:[%s4968_s5 + $0xc8] sm:$0xff] }
 0x12d   :  { %5148 = vst [vmem:[#allocation10_spill] sm:$0xff] %v3613_v18  ;;  %5150 = vst [vmem:[#allocation11_spill] sm:$0xff] %v3617_v0  ;;  %v5157_v18 = vld [vmem:[#allocation17_spill] sm:$0xff]  ;;  %1366 = vperm.xlu1 %2617, %v1260_v61   ;;  %v1262_v61 = vld [vmem:[%s4968_s5 + $0xa0] sm:$0xff]  ;;  %v3761_v54 = vmul.f32 %v3215_v37, %v5197_v42 }
 0x12e   :  { %5151 = vst [vmem:[#allocation12_spill] sm:$0xff] %v3619_v3  ;;  %5152 = vst [vmem:[#allocation13_spill] sm:$0xff] %v3621_v19  ;;  %v3637_v11 = vmul.f32 %v3175_v33, %v5157_v18  ;;  %v3641_v19 = vmul.f32 %v3178_v1, %v5157_v18  ;;  %v5160_v3 = vld [vmem:[#allocation18_spill] sm:$0xff]  ;;  %v3660_v18 = vmul.f32 %v3178_v1, %v5163_v15  ;;  %v5202_v42 = vld [vmem:[#allocation31_spill] sm:$0xff] }
 0x12f   :  { %5153 = vst [vmem:[#allocation14_spill] sm:$0xff] %v3625_v39  ;;  %5155 = vst [vmem:[#allocation15_spill] sm:$0xff] %v3629_v41  ;;  %v3645_v24 = vmul.f32 %v3215_v37, %v5160_v3  ;;  %v3649_v41 = vmul.f32 %v3217_v32, %v5160_v3  ;;  %v5200_v39 = vld [vmem:[#allocation41_spill] sm:$0xff] }
 0x130   :  { %5156 = vst [vmem:[#allocation16_spill] sm:$0xff] %v3633_v40  ;;  %5158 = vst [vmem:[#allocation17_spill] sm:$0xff] %v3637_v11  ;;  %v5166_v40 = vld [vmem:[#allocation20_spill] sm:$0xff]  ;;  %v3695_v11 = vpop.permute.xlu0 %189  ;;  %1401 = vperm.xlu0 %2616, %v1267_v7  }
 0x131   :  { %5159 = vst [vmem:[#allocation74_spill] sm:$0xff] %v3641_v19  ;;  %5161 = vst [vmem:[#allocation18_spill] sm:$0xff] %v3645_v24  ;;  %v3664_v24 = vmul.f32 %v3215_v37, %v5166_v40  ;;  %v3668_v3 = vmul.f32 %v3217_v32, %v5166_v40  ;;  %1376 = vperm.xlu1 %2617, %v1262_v61   ;;  %v1264_v61 = vld [vmem:[%s4968_s5 + $0xb0] sm:$0xff] }
 0x132   :  { %5162 = vst [vmem:[#allocation75_spill] sm:$0xff] %v3649_v41  ;;  %5164 = vst [vmem:[#allocation19_spill] sm:$0xff] %v3653_v4  ;;  %v5169_v41 = vld [vmem:[#allocation21_spill] sm:$0xff] }
 0x133   :  { %5165 = vst [vmem:[#allocation76_spill] sm:$0xff] %v3660_v18  ;;  %5167 = vst [vmem:[#allocation20_spill] sm:$0xff] %v3664_v24  ;;  %v3672_v4 = vmul.f32 %v3175_v33, %v5169_v41  ;;  %v3679_v15 = vmul.f32 %v3178_v1, %v5169_v41  ;;  %v5172_v18 = vld [vmem:[#allocation22_spill] sm:$0xff] }
 0x134   :  { %5168 = vst [vmem:[#allocation77_spill] sm:$0xff] %v3668_v3  ;;  %v3683_v19 = vmul.f32 %v3215_v37, %v5172_v18  ;;  %v3687_v40 = vmul.f32 %v3217_v32, %v5172_v18  ;;  %v5175_v3 = vld [vmem:[#allocation23_spill] sm:$0xff]  ;;  %5178 = vst [vmem:[#allocation81_spill] sm:$0xff] %v3695_v11  ;;  %v5184_v11 = vld [vmem:[#allocation25_spill] sm:$0xff]  ;;  %v3753_v44 = vpop.permute.xlu0 %199 }
 0x135   :  { %5170 = vst [vmem:[#allocation21_spill] sm:$0xff] %v3672_v4  ;;  %5171 = vst [vmem:[#allocation78_spill] sm:$0xff] %v3679_v15  ;;  %v3691_v24 = vmul.f32 %v3175_v33, %v5175_v3  ;;  %v3693_v4 = vpop.permute.xlu1 %669  ;;  %v3699_v41 = vmul.f32 %v3178_v1, %v5175_v3  ;;  %v5180_v15 = vld [vmem:[#allocation24_spill] sm:$0xff]  ;;  %v5186_v3 = vld [vmem:[#allocation35_spill] sm:$0xff]  ;;  %v3726_v7 = vmul.f32 %v3178_v1, %v5184_v11  ;;  %1386 = vperm.xlu1 %2617, %v1264_v61  }
 0x136   :  { %5173 = vst [vmem:[#allocation22_spill] sm:$0xff] %v3683_v19  ;;  %5174 = vst [vmem:[#allocation79_spill] sm:$0xff] %v3687_v40  ;;  %v3703_v13 = vmul.f32 %v3215_v37, %v5180_v15  ;;  %v5182_v19 = vld [vmem:[#allocation32_spill] sm:$0xff] }
 0x137   :  { %5176 = vst [vmem:[#allocation23_spill] sm:$0xff] %v3691_v24  ;;  %5177 = vst [vmem:[#allocation80_spill] sm:$0xff] %v3693_v4  ;;  %v246_v18 = vmul.f32 %v3188_v30, %v5182_v19  ;;  %v247_v40 = vmul.f32 %v3191_v31, %v5182_v19  ;;  %v3711_v24 = vmul.f32 %v3217_v32, %v5180_v15  ;;  %v1269_v19 = vld [vmem:[%s4968_s5 + $0xd8] sm:$0xff] }
 0x138   :  { %5179 = vst [vmem:[#allocation82_spill] sm:$0xff] %v3699_v41  ;;  %5181 = vst [vmem:[#allocation24_spill] sm:$0xff] %v3703_v13  ;;  %v3715_v4 = vmul.f32 %v3175_v33, %v5184_v11  ;;  %v248_v41 = vmul.f32 %v3188_v30, %v5186_v3  ;;  %v249_v13 = vmul.f32 %v3191_v31, %v5186_v3  ;;  %v5188_v15 = vld [vmem:[#allocation26_spill] sm:$0xff]  ;;  %1411 = vperm.xlu0 %2616, %v1269_v19  }
 0x139   :  { %5183 = vst [vmem:[#allocation32_spill] sm:$0xff] %v3711_v24  ;;  %5187 = vst [vmem:[#allocation35_spill] sm:$0xff] %v3726_v7  ;;  %v3730_v24 = vmul.f32 %v3215_v37, %v5188_v15  ;;  %v3738_v3 = vmul.f32 %v3175_v33, %v5191_v26  ;;  %v730_v11 = vmul.f32 %v3215_v37, %v5193_v43  ;;  %v5206_v19 = vld [vmem:[#allocation38_spill] sm:$0xff] }
 0x13a   :  { %5185 = vst [vmem:[#allocation25_spill] sm:$0xff] %v3715_v4  ;;  %v3734_v4 = vmul.f32 %v3217_v32, %v5188_v15  ;;  %v731_v7 = vmul.f32 %v3217_v32, %v5193_v43  ;;  %v255_v15 = vmul.f32 %v3191_v31, %v5194_v14  ;;  %5196 = vst [vmem:[#allocation37_spill] sm:$0xff] %v3753_v44 }
 0x13b   :  { %5189 = vst [vmem:[#allocation26_spill] sm:$0xff] %v3730_v24  ;;  %5192 = vst [vmem:[#allocation27_spill] sm:$0xff] %v3738_v3  ;;  %v254_v24 = vmul.f32 %v3188_v30, %v5194_v14  ;;  %v3757_v3 = vmul.f32 %v3178_v1, %v5191_v26  ;;  %v520_v43 = vadd.f32 %v5199_v50, %v246_v18  ;;  %v3793_v18 = vpop.permute.xlu0 %209 }
 0x13c   :  { %5190 = vst [vmem:[#allocation83_spill] sm:$0xff] %v3734_v4  ;;  %v3751_v4 = vpop.permute.xlu1 %677  ;;  %5198 = vst [vmem:[#allocation84_spill] sm:$0xff] %v3761_v54  ;;  %v521_v0 = vadd.f32 %v5200_v39, %v247_v40  ;;  %v522_v16 = vadd.f32 %v3471_v25, %v248_v41  ;;  %v523_v14 = vadd.f32 %v3479_v56, %v249_v13  ;;  %v1271_v54 = vld [vmem:[%s4968_s5 + $0xe8] sm:$0xff] }
 0x13d   :  { %5195 = vst [vmem:[#allocation34_spill] sm:$0xff] %v3751_v4  ;;  %v5201_v4 = vld [vmem:[#allocation39_spill] sm:$0xff]  ;;  %v3776_v50 = vmul.f32 %v3175_v33, %v5202_v42  ;;  %v3780_v25 = vmul.f32 %v3178_v1, %v5202_v42  ;;  %v5205_v13 = vld [vmem:[#allocation36_spill] sm:$0xff]  ;;  %v528_v40 = vadd.f32 %v3505_v59, %v254_v24  ;;  %v529_v41 = vadd.f32 %v3512_v38, %v255_v15 }
 0x13e   :  { %v258_v44 = vmul.f32 %v3188_v30, %v5201_v4  ;;  %v259_v26 = vmul.f32 %v3191_v31, %v5201_v4  ;;  %v734_v56 = vmul.f32 %v3215_v37, %v5205_v13  ;;  %v735_v39 = vmul.f32 %v3217_v32, %v5205_v13  ;;  %v1266_v4 = vld [vmem:[%s4968_s5 + $0xc0] sm:$0xff]  ;;  %1421 = vperm.xlu0 %2616, %v1271_v54   ;;  %v5208_v15 = vld [vmem:[#allocation48_spill] sm:$0xff] }
 0x13f   :  { %5203 = vst [vmem:[#allocation40_spill] sm:$0xff] %v3776_v50  ;;  %5204 = vst [vmem:[#allocation41_spill] sm:$0xff] %v3780_v25  ;;  %v3795_v1 = vadd.f32 %v730_v11, %v520_v43  ;;  %v3797_v42 = vadd.f32 %v731_v7, %v521_v0  ;;  %v736_v61 = vmul.f32 %v3215_v37, %v5206_v19  ;;  %v5207_v25 = vld [vmem:[#allocation46_spill] sm:$0xff]  ;;  %1396 = vperm.xlu1 %2617, %v1266_v4  }
 0x140   :  { %v3791_v33 = vpop.permute.xlu1 %685  ;;  %v737_v13 = vmul.f32 %v3217_v32, %v5206_v19  ;;  %v262_v50 = vmul.f32 %v3188_v30, %v5207_v25  ;;  %v263_v59 = vmul.f32 %v3191_v31, %v5207_v25  ;;  %v532_v38 = vadd.f32 %v3524_v47, %v258_v44  ;;  %v1273_v0 = vld [vmem:[%s4968_s5 + $0xf8] sm:$0xff]  ;;  %v1268_v44 = vld [vmem:[%s4968_s5 + $0xd0] sm:$0xff]  ;;  %v5213_v19 = vld [vmem:[#allocation43_spill] sm:$0xff] }
 0x141   :  { %v533_v24 = vadd.f32 %v3531_v8, %v259_v26  ;;  %v3813_v7 = vadd.f32 %v3483_v45, %v522_v16  ;;  %v3816_v11 = vadd.f32 %v3487_v57, %v523_v14  ;;  %v266_v43 = vmul.f32 %v3188_v30, %v5208_v15  ;;  %v5209_v16 = vld [vmem:[#allocation45_spill] sm:$0xff]  ;;  %v3837_v26 = vpop.permute.xlu0 %219 }
 0x142   :  { %v267_v54 = vmul.f32 %v3191_v31, %v5208_v15  ;;  %v3826_v47 = vadd.f32 %v734_v56, %v3494_v36  ;;  %v3829_v8 = vadd.f32 %v735_v39, %v3497_v5  ;;  %v740_v45 = vmul.f32 %v3215_v37, %v5209_v16  ;;  %5211 = vst [vmem:[#allocation31_spill] sm:$0xff] %v3837_v26  ;;  %v5212_v56 = vld [vmem:[#allocation42_spill] sm:$0xff] }
 0x143   :  { %v741_v57 = vmul.f32 %v3217_v32, %v5209_v16  ;;  %v3840_v25 = vadd.f32 %v3491_v58, %v528_v40  ;;  %v3843_v4 = vadd.f32 %v3501_v6, %v529_v41  ;;  %v536_v36 = vadd.f32 %v3543_v63, %v262_v50  ;;  %1431 = vperm.xlu0 %2616, %v1273_v0   ;;  %v1863_v6 = vld [vmem:[%s4971_s6 + $0x8] sm:$0xff]  ;;  %v5214_v50 = vld [vmem:[#allocation47_spill] sm:$0xff] }
 0x144   :  { %v3835_v14 = vpop.permute.xlu1 %693  ;;  %v537_v5 = vadd.f32 %v3551_v53, %v263_v59  ;;  %v3848_v39 = vadd.f32 %v736_v61, %v5212_v56  ;;  %v3851_v15 = vadd.f32 %v737_v13, %v5213_v19  ;;  %v270_v16 = vmul.f32 %v3188_v30, %v3347_v22  ;;  %1406 = vperm.xlu1 %2617, %v1268_v44   ;;  %v1270_v13 = vld [vmem:[%s4968_s5 + $0xe0] sm:$0xff] }
 0x145   :  { %5210 = vst [vmem:[#allocation39_spill] sm:$0xff] %v3835_v14  ;;  %v271_v58 = vmul.f32 %v3191_v31, %v3347_v22  ;;  %v3861_v63 = vadd.f32 %v3516_v29, %v532_v38  ;;  %v3864_v53 = vadd.f32 %v3520_v10, %v533_v24  ;;  %v744_v40 = vmul.f32 %v3215_v37, %v5214_v50  ;;  %v893_v38 = vpop.permute.xlu0 %892  ;;  %v5216_v24 = vld [vmem:[#allocation44_spill] sm:$0xff] }
 0x146   :  { %v745_v41 = vmul.f32 %v3217_v32, %v5214_v50  ;;  %v540_v61 = vadd.f32 %v3563_v9, %v266_v43  ;;  %v541_v22 = vadd.f32 %v3567_v21, %v267_v54  ;;  %v748_v29 = vmul.f32 %v3215_v37, %v3345_v35  ;;  %v5220_v50 = vld [vmem:[#allocation14_spill] sm:$0xff] }
 0x147   :  { %v274_v10 = vmul.f32 %v3188_v30, %v3389_v55  ;;  %v3882_v0 = vadd.f32 %v740_v45, %v5216_v24  ;;  %v3885_v9 = vadd.f32 %v741_v57, %v3326_v20  ;;  %v749_v21 = vmul.f32 %v3217_v32, %v3345_v35  ;;  %1901 = vperm.xlu0 %2616, %v1863_v6  }
 0x148   :  { %v3879_v59 = vpop.permute.xlu1 %701  ;;  %v275_v43 = vmul.f32 %v3191_v31, %v3389_v55  ;;  %v3892_v54 = vadd.f32 %v3535_v48, %v536_v36  ;;  %v3895_v44 = vadd.f32 %v3539_v49, %v537_v5  ;;  %v544_v56 = vadd.f32 %v3579_v46, %v270_v16  ;;  %1416 = vperm.xlu1 %2617, %v1270_v13   ;;  %v1865_v55 = vld [vmem:[%s4971_s6 + $0x18] sm:$0xff]  ;;  %v1272_v48 = vld [vmem:[%s4968_s5 + $0xf0] sm:$0xff] }
 0x149   :  { %5215 = vst [vmem:[#allocation36_spill] sm:$0xff] %v3879_v59  ;;  %v545_v45 = vadd.f32 %v3586_v62, %v271_v58  ;;  %v278_v20 = vmul.f32 %v3188_v30, %v3431_v12  ;;  %v279_v35 = vmul.f32 %v3191_v31, %v3431_v12  ;;  %v3910_v49 = vadd.f32 %v744_v40, %v3328_v23  ;;  %v908_v23 = vpop.permute.xlu0 %907  ;;  %v5218_v58 = vld [vmem:[#allocation49_spill] sm:$0xff] }
 0x14a   :  { %v3913_v46 = vadd.f32 %v745_v41, %v3330_v17  ;;  %v3916_v62 = vadd.f32 %v3555_v60, %v540_v61  ;;  %v3919_v12 = vadd.f32 %v3559_v34, %v541_v22  ;;  %v752_v57 = vmul.f32 %v3215_v37, %v3387_v27  ;;  %v5222_v61 = vld [vmem:[#allocation6_spill] sm:$0xff] }
 0x14b   :  { %v753_v36 = vmul.f32 %v3217_v32, %v3387_v27  ;;  %v548_v5 = vadd.f32 %v3598_v2, %v274_v10  ;;  %v3929_v17 = vadd.f32 %v748_v29, %v3332_v51  ;;  %v549_v60 = vadd.f32 %v3605_v28, %v275_v43  ;;  %1911 = vperm.xlu0 %2616, %v1865_v55   ;;  %v5219_v27 = vld [vmem:[#allocation11_spill] sm:$0xff]  ;;  %v1867_v51 = vld [vmem:[%s4971_s6 + $0x28] sm:$0xff]  ;;  %v5221_v28 = vld [vmem:[#allocation5_spill] sm:$0xff] }
 0x14c   :  { %v3926_v19 = vpop.permute.xlu1 %709  ;;  %v756_v34 = vmul.f32 %v3215_v37, %v3429_v52  ;;  %v757_v16 = vmul.f32 %v3217_v32, %v3429_v52  ;;  %v3937_v6 = vadd.f32 %v749_v21, %v5218_v58  ;;  %v552_v2 = vadd.f32 %v5219_v27, %v278_v20  ;;  %1426 = vperm.xlu1 %2617, %v1272_v48   ;;  %v5223_v52 = vld [vmem:[#allocation72_spill] sm:$0xff]  ;;  %v5224_v29 = vld [vmem:[#allocation73_spill] sm:$0xff]  ;;  %v1862_v43 = vld [vmem:[%s4971_s6] sm:$0xff] }
 0x14d   :  { %5217 = vst [vmem:[#allocation38_spill] sm:$0xff] %v3926_v19  ;;  %v553_v40 = vadd.f32 %v5220_v50, %v279_v35  ;;  %v3945_v41 = vadd.f32 %v5221_v28, %v544_v56  ;;  %v3948_v22 = vadd.f32 %v5222_v61, %v545_v45  ;;  %v760_v13 = vmul.f32 %v3215_v37, %v5223_v52  ;;  %v918_v20 = vpop.permute.xlu0 %917  ;;  %v5225_v45 = vld [vmem:[#allocation50_spill] sm:$0xff]  ;;  %v5226_v55 = vld [vmem:[#allocation51_spill] sm:$0xff]  ;;  %v5228_v28 = vld [vmem:[#allocation52_spill] sm:$0xff] }
 0x14e   :  { %v282_v10 = vmul.f32 %v3188_v30, %v5224_v29  ;;  %v283_v24 = vmul.f32 %v3191_v31, %v5224_v29  ;;  %v1051_v21 = vadd.f32 %v893_v38, %v3797_v42  ;;  %v1050_v56 = vadd.f32 %v893_v38, %v3795_v1  ;;  %v5227_v58 = vld [vmem:[#allocation7_spill] sm:$0xff]  ;;  %v5229_v29 = vld [vmem:[#allocation53_spill] sm:$0xff]  ;;  %v5230_v38 = vld [vmem:[#allocation8_spill] sm:$0xff] }
 0x14f   :  { %v3962_v35 = vadd.f32 %v752_v57, %v5225_v45  ;;  %v3965_v48 = vadd.f32 %v753_v36, %v5226_v55  ;;  %v3968_v27 = vadd.f32 %v5227_v58, %v548_v5  ;;  %v761_v50 = vmul.f32 %v3217_v32, %v5223_v52  ;;  %1921 = vperm.xlu0 %2616, %v1867_v51   ;;  %v1869_v5 = vld [vmem:[%s4971_s6 + $0x38] sm:$0xff]  ;;  %v5231_v52 = vld [vmem:[#allocation9_spill] sm:$0xff] }
 0x150   :  { %v898_v42 = vpop.permute.xlu1 %897  ;;  %v3973_v61 = vadd.f32 %v756_v34, %v5228_v28  ;;  %v3976_v1 = vadd.f32 %v757_v16, %v5229_v29  ;;  %v3979_v57 = vadd.f32 %v5230_v38, %v549_v60  ;;  %1896 = vperm.xlu1 %2617, %v1862_v43   ;;  %v3987_v51 = vadd.f32 %v5231_v52, %v552_v2  ;;  %v5232_v34 = vld [vmem:[#allocation10_spill] sm:$0xff]  ;;  %v5233_v16 = vld [vmem:[#allocation17_spill] sm:$0xff] }
 0x151   :  { %v1052_v36 = vadd.f32 %v898_v42, %v3813_v7  ;;  %v1053_v45 = vadd.f32 %v898_v42, %v3816_v11  ;;  %v3990_v55 = vadd.f32 %v5232_v34, %v553_v40  ;;  %v556_v58 = vadd.f32 %v5233_v16, %v282_v10  ;;  %v5234_v28 = vld [vmem:[#allocation74_spill] sm:$0xff]  ;;  %v1864_v7 = vld [vmem:[%s4971_s6 + $0x10] sm:$0xff]  ;;  %v928_v38 = vpop.permute.xlu0 %927  ;;  %v5236_v40 = vld [vmem:[#allocation4_spill] sm:$0xff] }
 0x152   :  { %v557_v60 = vadd.f32 %v5234_v28, %v283_v24  ;;  %v1115_v11 = vmax.f32 %v1051_v21, 0.0  ;;  %v5235_v43 = vld [vmem:[#allocation54_spill] sm:$0xff]  ;;  %v1057_v29 = vadd.f32 %v908_v23, %v3851_v15  ;;  %v1114_v52 = vmax.f32 %v1050_v56, 0.0  ;;  %v5237_v21 = vld [vmem:[#allocation55_spill] sm:$0xff] }
 0x153   :  { %v3998_v42 = vadd.f32 %v760_v13, %v5235_v43  ;;  %v1117_v2 = vmax.f32 %v1053_v45, 0.0  ;;  %v1116_v19 = vmax.f32 %v1052_v36, 0.0  ;;  %v286_v34 = vmul.f32 %v3188_v30, %v5236_v40  ;;  %1931 = vperm.xlu0 %2616, %v1869_v5   ;;  %v1871_v36 = vld [vmem:[%s4971_s6 + $0x48] sm:$0xff]  ;;  %v5238_v43 = vld [vmem:[#allocation3_spill] sm:$0xff] }
 0x154   :  { %v287_v10 = vmul.f32 %v3191_v31, %v5236_v40  ;;  %v1056_v24 = vadd.f32 %v908_v23, %v3848_v39  ;;  %v903_v16 = vpop.permute.xlu1 %902  ;;  %v4007_v28 = vadd.f32 %v761_v50, %v5237_v21  ;;  %1906 = vperm.xlu1 %2617, %v1864_v7   ;;  %v764_v40 = vmul.f32 %v3215_v37, %v5238_v43  ;;  %v1866_v23 = vld [vmem:[%s4971_s6 + $0x20] sm:$0xff] }
 0x155   :  { %v1054_v13 = vadd.f32 %v903_v16, %v3826_v47  ;;  %v1055_v15 = vadd.f32 %v903_v16, %v3829_v8  ;;  %v1211_v56 = vpack.c.bf16 %v1117_v2, %v1115_v11  ;;  %v1210_v45 = vpack.c.bf16 %v1116_v19, %v1114_v52  ;;  %v5239_v47 = vld [vmem:[#allocation15_spill] sm:$0xff]  ;;  %v5240_v8 = vld [vmem:[#allocation16_spill] sm:$0xff]  ;;  %v938_v52 = vpop.permute.xlu0 %937 }
 0x156   :  { %v765_v39 = vmul.f32 %v3217_v32, %v5238_v43  ;;  %v4022_v50 = vadd.f32 %v5239_v47, %v556_v58  ;;  %v4025_v5 = vadd.f32 %v5240_v8, %v557_v60  ;;  %v1121_v7 = vmax.f32 %v1057_v29, 0.0  ;;  %v5241_v16 = vld [vmem:[#allocation19_spill] sm:$0xff]  ;;  %v5242_v43 = vld [vmem:[#allocation76_spill] sm:$0xff]  ;;  %v5246_v8 = vld [vmem:[#allocation13_spill] sm:$0xff] }
 0x157   :  { %v1061_v11 = vadd.f32 %v918_v20, %v3885_v9  ;;  %v1118_v19 = vmax.f32 %v1054_v13, 0.0  ;;  %v1119_v2 = vmax.f32 %v1055_v15, 0.0  ;;  %1669 = vmatprep.subr.bf16.mxu0 %v1211_v56  ;;  %2575 = vmatprep.subr.bf16.mxu1 %v1211_v56  ;;  %v560_v21 = vadd.f32 %v5241_v16, %v286_v34  ;;  %v1873_v13 = vld [vmem:[%s4971_s6 + $0x58] sm:$0xff]  ;;  %v5243_v34 = vld [vmem:[#allocation12_spill] sm:$0xff] }
 0x158   :  { %v561_v59 = vadd.f32 %v5242_v43, %v287_v10  ;;  %v1120_v26 = vmax.f32 %v1056_v24, 0.0  ;;  %v1060_v14 = vadd.f32 %v918_v20, %v3882_v0  ;;  %v913_v58 = vpop.permute.xlu1 %912  ;;  %1941 = vperm.xlu0 %2616, %v1871_v36   ;;  %1670 = vmatpush1.bf16.msra.mxu0 %v1210_v45  ;;  %v768_v10 = vmul.f32 %v3215_v37, %v5243_v34  ;;  %v1868_v0 = vld [vmem:[%s4971_s6 + $0x30] sm:$0xff]  ;;  %v5244_v20 = vld [vmem:[#allocation56_spill] sm:$0xff] }
 0x159   :  { %v1058_v60 = vadd.f32 %v913_v58, %v3840_v25  ;;  %v1059_v29 = vadd.f32 %v913_v58, %v3843_v4  ;;  %2591 = vmatpush1.bf16.msra.mxu1 %v1210_v45  ;;  %1916 = vperm.xlu1 %2617, %v1866_v23   ;;  %v1213_v9 = vpack.c.bf16 %v1121_v7, %v1119_v2  ;;  %v5245_v25 = vld [vmem:[#allocation57_spill] sm:$0xff]  ;;  %v1125_v56 = vmax.f32 %v1061_v11, 0.0  ;;  %v948_v47 = vpop.permute.xlu0 %947  ;;  %v1875_v16 = vld [vmem:[%s4971_s6 + $0x68] sm:$0xff] }
 0x15a   :  { %v1212_v24 = vpack.c.bf16 %v1120_v26, %v1118_v19  ;;  %v4042_v15 = vadd.f32 %v764_v40, %v5244_v20  ;;  %v4045_v4 = vadd.f32 %v765_v39, %v5245_v25  ;;  %v1065_v36 = vadd.f32 %v928_v38, %v3913_v46  ;;  %v5250_v20 = vld [vmem:[#allocation78_spill] sm:$0xff] }
 0x15b   :  { %v1122_v45 = vmax.f32 %v1058_v60, 0.0  ;;  %v1123_v23 = vmax.f32 %v1059_v29, 0.0  ;;  %1671 = vmatprep.subr.bf16.mxu0 %v1213_v9  ;;  %2576 = vmatprep.subr.bf16.mxu1 %v1213_v9  ;;  %v290_v26 = vmul.f32 %v3188_v30, %v5246_v8  ;;  %v291_v7 = vmul.f32 %v3191_v31, %v5246_v8  ;;  %v5251_v8 = vld [vmem:[#allocation80_spill] sm:$0xff] }
 0x15c   :  { %v1124_v19 = vmax.f32 %v1060_v14, 0.0  ;;  %v1064_v40 = vadd.f32 %v928_v38, %v3910_v49  ;;  %v923_v2 = vpop.permute.xlu1 %922  ;;  %1951 = vperm.xlu0 %2616, %v1873_v13   ;;  %1672 = vmatpush1.bf16.msra.mxu0 %v1212_v24  ;;  %v769_v43 = vmul.f32 %v3217_v32, %v5243_v34  ;;  %v1870_v49 = vld [vmem:[%s4971_s6 + $0x40] sm:$0xff]  ;;  %v5247_v38 = vld [vmem:[#allocation18_spill] sm:$0xff]  ;;  %v1129_v60 = vmax.f32 %v1065_v36, 0.0  ;;  %v5249_v34 = vld [vmem:[#allocation21_spill] sm:$0xff] }
 0x15d   :  { %v1062_v39 = vadd.f32 %v923_v2, %v3861_v63  ;;  %v1063_v46 = vadd.f32 %v923_v2, %v3864_v53  ;;  %2592 = vmatpush1.bf16.msra.mxu1 %v1212_v24  ;;  %1926 = vperm.xlu1 %2617, %v1868_v0   ;;  %v1215_v11 = vpack.c.bf16 %v1125_v56, %v1123_v23  ;;  %v5248_v63 = vld [vmem:[#allocation75_spill] sm:$0xff]  ;;  %v958_v24 = vpop.permute.xlu0 %957  ;;  %v1877_v23 = vld [vmem:[%s4971_s6 + $0x78] sm:$0xff] }
 0x15e   :  { %v1214_v14 = vpack.c.bf16 %v1124_v19, %v1122_v45  ;;  %v4064_v58 = vadd.f32 %v5247_v38, %v560_v21  ;;  %v4067_v53 = vadd.f32 %v5248_v63, %v561_v59  ;;  %v1069_v29 = vadd.f32 %v938_v52, %v3937_v6 }
 0x15f   :  { %v1126_v9 = vmax.f32 %v1062_v39, 0.0  ;;  %v1127_v13 = vmax.f32 %v1063_v46, 0.0  ;;  %1673 = vmatprep.subr.bf16.mxu0 %v1215_v11  ;;  %2577 = vmatprep.subr.bf16.mxu1 %v1215_v11  ;;  %v564_v0 = vadd.f32 %v5249_v34, %v290_v26  ;;  %v565_v25 = vadd.f32 %v5250_v20, %v291_v7 }
 0x160   :  { %v1128_v56 = vmax.f32 %v1064_v40, 0.0  ;;  %v1068_v45 = vadd.f32 %v938_v52, %v3929_v17  ;;  %v933_v21 = vpop.permute.xlu1 %932  ;;  %1961 = vperm.xlu0 %2616, %v1875_v16   ;;  %1674 = vmatpush1.bf16.msra.mxu0 %v1214_v14  ;;  %v772_v26 = vmul.f32 %v3215_v37, %v5251_v8  ;;  %v1872_v17 = vld [vmem:[%s4971_s6 + $0x50] sm:$0xff]  ;;  %v5252_v52 = vld [vmem:[#allocation58_spill] sm:$0xff]  ;;  %v1133_v40 = vmax.f32 %v1069_v29, 0.0  ;;  %v1879_v29 = vld [vmem:[%s4971_s6 + $0x88] sm:$0xff] }
 0x161   :  { %v1066_v59 = vadd.f32 %v933_v21, %v3892_v54  ;;  %v1067_v36 = vadd.f32 %v933_v21, %v3895_v44  ;;  %2593 = vmatpush1.bf16.msra.mxu1 %v1214_v14  ;;  %1936 = vperm.xlu1 %2617, %v1870_v49   ;;  %v1217_v6 = vpack.c.bf16 %v1129_v60, %v1127_v13  ;;  %v5253_v54 = vld [vmem:[#allocation59_spill] sm:$0xff]  ;;  %v968_v11 = vpop.permute.xlu0 %967  ;;  %v5254_v16 = vld [vmem:[#allocation81_spill] sm:$0xff] }
 0x162   :  { %v1216_v7 = vpack.c.bf16 %v1128_v56, %v1126_v9  ;;  %v4084_v19 = vadd.f32 %v768_v10, %v5252_v52  ;;  %v4087_v44 = vadd.f32 %v769_v43, %v5253_v54  ;;  %v1073_v2 = vadd.f32 %v948_v47, %v3965_v48  ;;  %v1881_v54 = vld [vmem:[%s4971_s6 + $0x98] sm:$0xff] }
 0x163   :  { %v1130_v39 = vmax.f32 %v1066_v59, 0.0  ;;  %v1131_v46 = vmax.f32 %v1067_v36, 0.0  ;;  %1675 = vmatprep.subr.bf16.mxu0 %v1217_v6  ;;  %2578 = vmatprep.subr.bf16.mxu1 %v1217_v6  ;;  %v294_v14 = vmul.f32 %v3188_v30, %v5254_v16  ;;  %v295_v49 = vmul.f32 %v3191_v31, %v5254_v16  ;;  %v5257_v36 = vld [vmem:[#allocation23_spill] sm:$0xff] }
 0x164   :  { %v1132_v38 = vmax.f32 %v1068_v45, 0.0  ;;  %v1072_v10 = vadd.f32 %v948_v47, %v3962_v35  ;;  %v943_v63 = vpop.permute.xlu1 %942  ;;  %1971 = vperm.xlu0 %2616, %v1877_v23   ;;  %1676 = vmatpush1.bf16.msra.mxu0 %v1216_v7  ;;  %v773_v9 = vmul.f32 %v3217_v32, %v5251_v8  ;;  %v1874_v35 = vld [vmem:[%s4971_s6 + $0x60] sm:$0xff]  ;;  %v5255_v47 = vld [vmem:[#allocation20_spill] sm:$0xff]  ;;  %v1137_v20 = vmax.f32 %v1073_v2, 0.0  ;;  %v5258_v23 = vld [vmem:[#allocation82_spill] sm:$0xff] }
 0x165   :  { %v1070_v43 = vadd.f32 %v943_v63, %v3916_v62  ;;  %v1071_v48 = vadd.f32 %v943_v63, %v3919_v12  ;;  %2594 = vmatpush1.bf16.msra.mxu1 %v1216_v7  ;;  %1946 = vperm.xlu1 %2617, %v1872_v17   ;;  %v1219_v60 = vpack.c.bf16 %v1133_v40, %v1131_v46  ;;  %v5256_v62 = vld [vmem:[#allocation77_spill] sm:$0xff]  ;;  %v978_v59 = vpop.permute.xlu0 %977  ;;  %v5259_v40 = vld [vmem:[#allocation34_spill] sm:$0xff] }
 0x166   :  { %v1218_v13 = vpack.c.bf16 %v1132_v38, %v1130_v39  ;;  %v4106_v34 = vadd.f32 %v5255_v47, %v564_v0  ;;  %v4109_v12 = vadd.f32 %v5256_v62, %v565_v25  ;;  %v1077_v56 = vadd.f32 %v958_v24, %v3976_v1  ;;  %v5262_v63 = vld [vmem:[#allocation37_spill] sm:$0xff] }
 0x167   :  { %v1134_v45 = vmax.f32 %v1070_v43, 0.0  ;;  %v1135_v21 = vmax.f32 %v1071_v48, 0.0  ;;  %1677 = vmatprep.subr.bf16.mxu0 %v1219_v60  ;;  %2579 = vmatprep.subr.bf16.mxu1 %v1219_v60  ;;  %v568_v6 = vadd.f32 %v5257_v36, %v294_v14  ;;  %v569_v8 = vadd.f32 %v5258_v23, %v295_v49 }
 0x168   :  { %v1136_v7 = vmax.f32 %v1072_v10, 0.0  ;;  %v1076_v17 = vadd.f32 %v958_v24, %v3973_v61  ;;  %v953_v0 = vpop.permute.xlu1 %952  ;;  %1981 = vperm.xlu0 %2616, %v1879_v29   ;;  %1678 = vmatpush1.bf16.msra.mxu0 %v1218_v13  ;;  %v776_v2 = vmul.f32 %v3215_v37, %v5259_v40  ;;  %v1876_v61 = vld [vmem:[%s4971_s6 + $0x70] sm:$0xff]  ;;  %v5260_v24 = vld [vmem:[#allocation60_spill] sm:$0xff]  ;;  %v1141_v16 = vmax.f32 %v1077_v56, 0.0 }
 0x169   :  { %v1074_v25 = vadd.f32 %v953_v0, %v3945_v41  ;;  %v1075_v52 = vadd.f32 %v953_v0, %v3948_v22  ;;  %2595 = vmatpush1.bf16.msra.mxu1 %v1218_v13  ;;  %1956 = vperm.xlu1 %2617, %v1874_v35   ;;  %v1221_v1 = vpack.c.bf16 %v1137_v20, %v1135_v21  ;;  %v5261_v41 = vld [vmem:[#allocation61_spill] sm:$0xff]  ;;  %v988_v10 = vpop.permute.xlu0 %987  ;;  %v1883_v35 = vld [vmem:[%s4971_s6 + $0xa8] sm:$0xff]  ;;  %v5266_v0 = vld [vmem:[#allocation35_spill] sm:$0xff] }
 0x16a   :  { %v1220_v39 = vpack.c.bf16 %v1136_v7, %v1134_v45  ;;  %v4126_v46 = vadd.f32 %v772_v26, %v5260_v24  ;;  %v4129_v22 = vadd.f32 %v773_v9, %v5261_v41  ;;  %v1081_v14 = vadd.f32 %v968_v11, %v4007_v28  ;;  %v5265_v7 = vld [vmem:[#allocation25_spill] sm:$0xff] }
 0x16b   :  { %v1138_v49 = vmax.f32 %v1074_v25, 0.0  ;;  %v1139_v38 = vmax.f32 %v1075_v52, 0.0  ;;  %1679 = vmatprep.subr.bf16.mxu0 %v1221_v1  ;;  %2580 = vmatprep.subr.bf16.mxu1 %v1221_v1  ;;  %v298_v43 = vmul.f32 %v3188_v30, %v5262_v63  ;;  %v299_v48 = vmul.f32 %v3191_v31, %v5262_v63 }
 0x16c   :  { %v1140_v60 = vmax.f32 %v1076_v17, 0.0  ;;  %v1080_v26 = vadd.f32 %v968_v11, %v3998_v42  ;;  %v963_v29 = vpop.permute.xlu1 %962  ;;  %1991 = vperm.xlu0 %2616, %v1881_v54   ;;  %1680 = vmatpush1.bf16.msra.mxu0 %v1220_v39  ;;  %v777_v47 = vmul.f32 %v3217_v32, %v5259_v40  ;;  %v1878_v42 = vld [vmem:[%s4971_s6 + $0x80] sm:$0xff]  ;;  %v5263_v11 = vld [vmem:[#allocation22_spill] sm:$0xff]  ;;  %v1145_v56 = vmax.f32 %v1081_v14, 0.0 }
 0x16d   :  { %v1078_v9 = vadd.f32 %v963_v29, %v3968_v27  ;;  %v1079_v28 = vadd.f32 %v963_v29, %v3979_v57  ;;  %2596 = vmatpush1.bf16.msra.mxu1 %v1220_v39  ;;  %1966 = vperm.xlu1 %2617, %v1876_v61   ;;  %v1223_v13 = vpack.c.bf16 %v1141_v16, %v1139_v38  ;;  %v5264_v27 = vld [vmem:[#allocation79_spill] sm:$0xff]  ;;  %v998_v23 = vpop.permute.xlu0 %997  ;;  %v1885_v40 = vld [vmem:[%s4971_s6 + $0xb8] sm:$0xff] }
 0x16e   :  { %v1222_v62 = vpack.c.bf16 %v1140_v60, %v1138_v49  ;;  %v4148_v20 = vadd.f32 %v5263_v11, %v568_v6  ;;  %v4151_v57 = vadd.f32 %v5264_v27, %v569_v8  ;;  %v1085_v45 = vadd.f32 %v978_v59, %v4045_v4  ;;  %v5267_v61 = vld [vmem:[#allocation62_spill] sm:$0xff] }
 0x16f   :  { %v1142_v21 = vmax.f32 %v1078_v9, 0.0  ;;  %v1143_v36 = vmax.f32 %v1079_v28, 0.0  ;;  %1681 = vmatprep.subr.bf16.mxu0 %v1223_v13  ;;  %2581 = vmatprep.subr.bf16.mxu1 %v1223_v13  ;;  %v572_v17 = vadd.f32 %v5265_v7, %v298_v43  ;;  %v573_v25 = vadd.f32 %v5266_v0, %v299_v48  ;;  %v1887_v9 = vld [vmem:[%s4971_s6 + $0xc8] sm:$0xff]  ;;  %v2182_v0 = vld [vmem:[%s4972_s7] sm:$0xff] }
 0x170   :  { %v1144_v52 = vmax.f32 %v1080_v26, 0.0  ;;  %v1084_v1 = vadd.f32 %v978_v59, %v4042_v15  ;;  %v973_v6 = vpop.permute.xlu1 %972  ;;  %2001 = vperm.xlu0 %2616, %v1883_v35   ;;  %1682 = vmatpush1.bf16.msra.mxu0 %v1222_v62  ;;  %v780_v39 = vmul.f32 %v3215_v37, %v3791_v33  ;;  %v4165_v24 = vadd.f32 %v776_v2, %v5267_v61  ;;  %v5268_v15 = vld [vmem:[#allocation63_spill] sm:$0xff] }
 0x171   :  { %v1082_v8 = vadd.f32 %v973_v6, %v3987_v51  ;;  %v1083_v54 = vadd.f32 %v973_v6, %v3990_v55  ;;  %2597 = vmatpush1.bf16.msra.mxu1 %v1222_v62  ;;  %1976 = vperm.xlu1 %2617, %v1878_v42   ;;  %v1225_v4 = vpack.c.bf16 %v1145_v56, %v1143_v36  ;;  %v1880_v51 = vld [vmem:[%s4971_s6 + $0x90] sm:$0xff]  ;;  %v1149_v55 = vmax.f32 %v1085_v45, 0.0  ;;  %v1008_v38 = vpop.permute.xlu0 %1007  ;;  %v5275_v61 = vld [vmem:[#allocation31_spill] sm:$0xff] }
 0x172   :  { %v841_v59 = vadd.f32 %v777_v47, %v5268_v15  ;;  %v1224_v41 = vpack.c.bf16 %v1144_v52, %v1142_v21  ;;  %v1089_v16 = vadd.f32 %v988_v10, %v4087_v44  ;;  %v302_v63 = vmul.f32 %v3188_v30, %v3793_v18  ;;  %v5273_v52 = vld [vmem:[#allocation64_spill] sm:$0xff] }
 0x173   :  { %v1146_v14 = vmax.f32 %v1082_v8, 0.0  ;;  %v1147_v49 = vmax.f32 %v1083_v54, 0.0  ;;  %1683 = vmatprep.subr.bf16.mxu0 %v1225_v4  ;;  %2582 = vmatprep.subr.bf16.mxu1 %v1225_v4  ;;  %v303_v2 = vmul.f32 %v3191_v31, %v3793_v18  ;;  %v1148_v43 = vmax.f32 %v1084_v1, 0.0 }
 0x174   :  { %v1088_v48 = vadd.f32 %v988_v10, %v4084_v19  ;;  %v983_v60 = vpop.permute.xlu1 %982  ;;  %2011 = vperm.xlu0 %2616, %v1885_v40   ;;  %1684 = vmatpush1.bf16.msra.mxu0 %v1224_v41  ;;  %v781_v18 = vmul.f32 %v3217_v32, %v3791_v33  ;;  %v1882_v19 = vld [vmem:[%s4971_s6 + $0xa0] sm:$0xff]  ;;  %v5269_v10 = vld [vmem:[#allocation24_spill] sm:$0xff]  ;;  %v1153_v35 = vmax.f32 %v1089_v16, 0.0  ;;  %v1093_v47 = vadd.f32 %v998_v23, %v4129_v22 }
 0x175   :  { %v1086_v26 = vadd.f32 %v983_v60, %v4022_v50  ;;  %v1087_v44 = vadd.f32 %v983_v60, %v4025_v5  ;;  %2598 = vmatpush1.bf16.msra.mxu1 %v1224_v41  ;;  %1986 = vperm.xlu1 %2617, %v1880_v51   ;;  %v1227_v29 = vpack.c.bf16 %v1149_v55, %v1147_v49  ;;  %v5270_v50 = vld [vmem:[#allocation32_spill] sm:$0xff]  ;;  %v1018_v11 = vpop.permute.xlu0 %1017  ;;  %v5271_v33 = vld [vmem:[#allocation27_spill] sm:$0xff]  ;;  %v2184_v49 = vld [vmem:[%s4972_s7 + $0x10] sm:$0xff] }
 0x176   :  { %v1226_v28 = vpack.c.bf16 %v1148_v43, %v1146_v14  ;;  %v4188_v13 = vadd.f32 %v5269_v10, %v572_v17  ;;  %v4191_v5 = vadd.f32 %v5270_v50, %v573_v25  ;;  %v576_v27 = vadd.f32 %v5271_v33, %v302_v63  ;;  %v5272_v25 = vld [vmem:[#allocation39_spill] sm:$0xff]  ;;  %v5281_v33 = vld [vmem:[#allocation66_spill] sm:$0xff] }
 0x177   :  { %v1150_v62 = vmax.f32 %v1086_v26, 0.0  ;;  %v1151_v42 = vmax.f32 %v1087_v44, 0.0  ;;  %1685 = vmatprep.subr.bf16.mxu0 %v1227_v29  ;;  %2583 = vmatprep.subr.bf16.mxu1 %v1227_v29  ;;  %v577_v56 = vadd.f32 %v3757_v3, %v303_v2  ;;  %v1152_v45 = vmax.f32 %v1088_v48, 0.0  ;;  %v5278_v44 = vld [vmem:[#allocation36_spill] sm:$0xff] }
 0x178   :  { %v1092_v21 = vadd.f32 %v998_v23, %v4126_v46  ;;  %v993_v36 = vpop.permute.xlu1 %992  ;;  %2021 = vperm.xlu0 %2616, %v1887_v9   ;;  %1686 = vmatpush1.bf16.msra.mxu0 %v1226_v28  ;;  %v784_v3 = vmul.f32 %v3215_v37, %v5272_v25  ;;  %v844_v1 = vadd.f32 %v780_v39, %v5273_v52  ;;  %v5274_v46 = vld [vmem:[#allocation65_spill] sm:$0xff] }
 0x179   :  { %v1090_v7 = vadd.f32 %v993_v36, %v4064_v58  ;;  %v1091_v17 = vadd.f32 %v993_v36, %v4067_v53  ;;  %2599 = vmatpush1.bf16.msra.mxu1 %v1226_v28  ;;  %1996 = vperm.xlu1 %2617, %v1882_v19   ;;  %v1229_v22 = vpack.c.bf16 %v1153_v35, %v1151_v42  ;;  %v1884_v58 = vld [vmem:[%s4971_s6 + $0xb0] sm:$0xff]  ;;  %v1157_v53 = vmax.f32 %v1093_v47, 0.0  ;;  %v1028_v51 = vpop.permute.xlu0 %1027  ;;  %v2186_v47 = vld [vmem:[%s4972_s7 + $0x20] sm:$0xff] }
 0x17a   :  { %v845_v23 = vadd.f32 %v781_v18, %v5274_v46  ;;  %v1228_v6 = vpack.c.bf16 %v1152_v45, %v1150_v62  ;;  %v1097_v8 = vadd.f32 %v1008_v38, %v841_v59  ;;  %v785_v40 = vmul.f32 %v3217_v32, %v5272_v25  ;;  %v5279_v18 = vld [vmem:[#allocation67_spill] sm:$0xff]  ;;  %v5280_v62 = vld [vmem:[#allocation40_spill] sm:$0xff]  ;;  %v5283_v52 = vld [vmem:[#allocation69_spill] sm:$0xff] }
 0x17b   :  { %v1154_v54 = vmax.f32 %v1090_v7, 0.0  ;;  %v1155_v4 = vmax.f32 %v1091_v17, 0.0  ;;  %1687 = vmatprep.subr.bf16.mxu0 %v1229_v22  ;;  %2584 = vmatprep.subr.bf16.mxu1 %v1229_v22  ;;  %v306_v15 = vmul.f32 %v3188_v30, %v5275_v61  ;;  %v1156_v39 = vmax.f32 %v1092_v21, 0.0  ;;  %v5282_v17 = vld [vmem:[#allocation38_spill] sm:$0xff] }
 0x17c   :  { %v1096_v41 = vadd.f32 %v1008_v38, %v4165_v24  ;;  %v1003_v55 = vpop.permute.xlu1 %1002  ;;  %2216 = vperm.xlu0 %2616, %v2182_v0   ;;  %1688 = vmatpush1.bf16.msra.mxu0 %v1228_v6  ;;  %v307_v30 = vmul.f32 %v3191_v31, %v5275_v61  ;;  %v1886_v24 = vld [vmem:[%s4971_s6 + $0xc0] sm:$0xff]  ;;  %v5276_v38 = vld [vmem:[#allocation26_spill] sm:$0xff]  ;;  %v1161_v43 = vmax.f32 %v1097_v8, 0.0  ;;  %v1101_v48 = vadd.f32 %v1018_v11, %v845_v23 }
 0x17d   :  { %v1094_v16 = vadd.f32 %v1003_v55, %v4106_v34  ;;  %v1095_v59 = vadd.f32 %v1003_v55, %v4109_v12  ;;  %2600 = vmatpush1.bf16.msra.mxu1 %v1228_v6  ;;  %2006 = vperm.xlu1 %2617, %v1884_v58   ;;  %v1231_v14 = vpack.c.bf16 %v1157_v53, %v1155_v4  ;;  %v5277_v34 = vld [vmem:[#allocation83_spill] sm:$0xff]  ;;  %v2188_v58 = vld [vmem:[%s4972_s7 + $0x30] sm:$0xff]  ;;  %v5285_v4 = vld [vmem:[#allocation68_spill] sm:$0xff] }
 0x17e   :  { %v1230_v63 = vpack.c.bf16 %v1156_v39, %v1154_v54  ;;  %v4225_v2 = vadd.f32 %v5276_v38, %v576_v27  ;;  %v4228_v12 = vadd.f32 %v5277_v34, %v577_v56  ;;  %v789_v31 = vmul.f32 %v3217_v32, %v5278_v44  ;;  %v1038_v56 = vpop.permute.xlu0 %1037  ;;  %v5284_v53 = vld [vmem:[#allocation41_spill] sm:$0xff]  ;;  %v2190_v34 = vld [vmem:[%s4972_s7 + $0x40] sm:$0xff] }
 0x17f   :  { %v1158_v60 = vmax.f32 %v1094_v16, 0.0  ;;  %v1159_v26 = vmax.f32 %v1095_v59, 0.0  ;;  %1689 = vmatprep.subr.bf16.mxu0 %v1231_v14  ;;  %2585 = vmatprep.subr.bf16.mxu1 %v1231_v14  ;;  %v1160_v29 = vmax.f32 %v1096_v41, 0.0  ;;  %v1100_v9 = vadd.f32 %v1018_v11, %v844_v1 }
 0x180   :  { %v849_v28 = vadd.f32 %v785_v40, %v5279_v18  ;;  %v1013_v19 = vpop.permute.xlu1 %1012  ;;  %2226 = vperm.xlu0 %2616, %v2184_v49   ;;  %1690 = vmatpush1.bf16.msra.mxu0 %v1230_v63  ;;  %v580_v42 = vadd.f32 %v5280_v62, %v306_v15  ;;  %v788_v11 = vmul.f32 %v3215_v37, %v5278_v44 }
 0x181   :  { %v1098_v10 = vadd.f32 %v1013_v19, %v4148_v20  ;;  %v1099_v50 = vadd.f32 %v1013_v19, %v4151_v57  ;;  %2601 = vmatpush1.bf16.msra.mxu1 %v1230_v63  ;;  %2016 = vperm.xlu1 %2617, %v1886_v24   ;;  %v1233_v35 = vpack.c.bf16 %v1161_v43, %v1159_v26  ;;  %v1888_v20 = vld [vmem:[%s4971_s6 + $0xd0] sm:$0xff]  ;;  %v1165_v57 = vmax.f32 %v1101_v48, 0.0  ;;  %v5289_v48 = vld [vmem:[#allocation84_spill] sm:$0xff] }
 0x182   :  { %v848_v27 = vadd.f32 %v784_v3, %v5281_v33  ;;  %v1232_v45 = vpack.c.bf16 %v1160_v29, %v1158_v60  ;;  %v1105_v21 = vadd.f32 %v1028_v51, %v849_v28  ;;  %v793_v22 = vmul.f32 %v3217_v32, %v5282_v17  ;;  %v1048_v14 = vpop.permute.xlu0 %1047 }
 0x183   :  { %v1162_v36 = vmax.f32 %v1098_v10, 0.0  ;;  %v1163_v7 = vmax.f32 %v1099_v50, 0.0  ;;  %1691 = vmatprep.subr.bf16.mxu0 %v1233_v35  ;;  %2586 = vmatprep.subr.bf16.mxu1 %v1233_v35  ;;  %v1164_v0 = vmax.f32 %v1100_v9, 0.0  ;;  %v853_v1 = vadd.f32 %v789_v31, %v5283_v52  ;;  %v2185_v31 = vld [vmem:[%s4972_s7 + $0x18] sm:$0xff]  ;;  %v2198_v52 = vld [vmem:[%s4972_s7 + $0x80] sm:$0xff] }
 0x184   :  { %v1104_v25 = vadd.f32 %v1028_v51, %v848_v27  ;;  %v1023_v3 = vpop.permute.xlu1 %1022  ;;  %2236 = vperm.xlu0 %2616, %v2186_v47   ;;  %1692 = vmatpush1.bf16.msra.mxu0 %v1232_v45  ;;  %v581_v8 = vadd.f32 %v5284_v53, %v307_v30  ;;  %v792_v54 = vmul.f32 %v3215_v37, %v5282_v17  ;;  %v5286_v51 = vld [vmem:[#allocation28_spill] sm:$0xff]  ;;  %v5287_v37 = vld [vmem:[#allocation71_spill] sm:$0xff]  ;;  %v2192_v47 = vld [vmem:[%s4972_s7 + $0x50] sm:$0xff] }
 0x185   :  { %v1102_v46 = vadd.f32 %v1023_v3, %v4188_v13  ;;  %v1103_v23 = vadd.f32 %v1023_v3, %v4191_v5  ;;  %2602 = vmatpush1.bf16.msra.mxu1 %v1232_v45  ;;  %2026 = vperm.xlu1 %2617, %v1888_v20   ;;  %v1235_v6 = vpack.c.bf16 %v1165_v57, %v1163_v7  ;;  %v2183_v13 = vld [vmem:[%s4972_s7 + $0x8] sm:$0xff]  ;;  %v1169_v5 = vmax.f32 %v1105_v21, 0.0  ;;  %v2194_v20 = vld [vmem:[%s4972_s7 + $0x60] sm:$0xff]  ;;  %v2189_v21 = vld [vmem:[%s4972_s7 + $0x38] sm:$0xff] }
 0x186   :  { %v852_v40 = vadd.f32 %v788_v11, %v5285_v4  ;;  %v1234_v61 = vpack.c.bf16 %v1164_v0, %v1162_v36  ;;  %v1109_v15 = vadd.f32 %v1038_v56, %v853_v1  ;;  %v791_v55 = vmul.f32 %v3217_v32, %v5286_v51  ;;  %v5288_v32 = vld [vmem:[#allocation70_spill] sm:$0xff]  ;;  %v2618_v36 = vld [vmem:[%s4970_s4] ss:$8 sps:$4 sm:$0xff]   ;;  %v2196_v17 = vld [vmem:[%s4972_s7 + $0x70] sm:$0xff] }
 0x187   :  { %v1166_v39 = vmax.f32 %v1102_v46, 0.0  ;;  %v1167_v41 = vmax.f32 %v1103_v23, 0.0  ;;  %1693 = vmatprep.subr.bf16.mxu0 %v1235_v6  ;;  %2587 = vmatprep.subr.bf16.mxu1 %v1235_v6  ;;  %v1168_v16 = vmax.f32 %v1104_v25, 0.0  ;;  %v857_v49 = vadd.f32 %v793_v22, %v5287_v37  ;;  %v2621_v7 = vld [vmem:[%s4970_s4 + $0x80] ss:$8 sps:$4 sm:$0xff]   ;;  %v2193_v1 = vld [vmem:[%s4972_s7 + $0x58] sm:$0xff] }
 0x188   :  { %v1108_v59 = vadd.f32 %v1038_v56, %v852_v40  ;;  %v1033_v30 = vpop.permute.xlu1 %1032  ;;  %2246 = vperm.xlu0 %2616, %v2188_v58   ;;  %1694 = vmatpush1.bf16.msra.mxu0 %v1234_v61  ;;  %v856_v43 = vadd.f32 %v792_v54, %v5288_v32  ;;  %v854_v60 = vadd.f32 %v5289_v48, %v580_v42  ;;  %v2187_v42 = vld [vmem:[%s4972_s7 + $0x28] sm:$0xff]  ;;  %v2624_v22 = vld [vmem:[%s4970_s4 + $0x14] ss:$8 sps:$4 sm:$0xff]   ;;  %v2628_v3 = vld [vmem:[%s4970_s4 + $0x10] ss:$8 sps:$4 sm:$0xff]  }
 0x189   :  { %v1106_v63 = vadd.f32 %v1033_v30, %v4225_v2  ;;  %v1107_v24 = vadd.f32 %v1033_v30, %v4228_v12  ;;  %2603 = vmatpush1.bf16.msra.mxu1 %v1234_v61  ;;  %2221 = vperm.xlu1 %2617, %v2183_v13   ;;  %v1237_v38 = vpack.c.bf16 %v1169_v5, %v1167_v41  ;;  %v1173_v2 = vmax.f32 %v1109_v15, 0.0  ;;  %v2191_v0 = vld [vmem:[%s4972_s7 + $0x48] sm:$0xff]  ;;  %v2626_v25 = vld [vmem:[%s4970_s4 + $0x94] ss:$8 sps:$4 sm:$0xff]   ;;  %v2629_v46 = vld [vmem:[%s4970_s4 + $0x90] ss:$8 sps:$4 sm:$0xff]   ;;  %v4353_v41 = vpop.permute.xlu0 %1281 }
 0x18a   :  { %v855_v26 = vadd.f32 %v791_v55, %v581_v8  ;;  %v1236_v44 = vpack.c.bf16 %v1168_v16, %v1166_v39  ;;  %v1113_v29 = vadd.f32 %v1048_v14, %v857_v49  ;;  %v1172_v18 = vmax.f32 %v1108_v59, 0.0  ;;  %v2200_v23 = vld [vmem:[%s4972_s7 + $0x90] sm:$0xff]  ;;  %v2630_v6 = vld [vmem:[%s4970_s4 + $0x24] ss:$8 sps:$4 sm:$0xff]   ;;  %v2197_v54 = vld [vmem:[%s4972_s7 + $0x78] sm:$0xff] }
 0x18b   :  { %v1170_v12 = vmax.f32 %v1106_v63, 0.0  ;;  %v1171_v9 = vmax.f32 %v1107_v24, 0.0  ;;  %1695 = vmatprep.subr.bf16.mxu0 %v1237_v38  ;;  %2588 = vmatprep.subr.bf16.mxu1 %v1237_v38  ;;  %v1112_v28 = vadd.f32 %v1048_v14, %v856_v43  ;;  %v2195_v58 = vld [vmem:[%s4972_s7 + $0x68] sm:$0xff]  ;;  %v2202_v8 = vld [vmem:[%s4972_s7 + $0xa0] sm:$0xff]  ;;  %v2204_v13 = vld [vmem:[%s4972_s7 + $0xb0] sm:$0xff] }
 0x18c   :  { %v1043_v19 = vpop.permute.xlu1 %1042  ;;  %2256 = vperm.xlu0 %2616, %v2190_v34   ;;  %1696 = vmatpush1.bf16.msra.mxu0 %v1236_v44  ;;  %v1177_v11 = vmax.f32 %v1113_v29, 0.0  ;;  %v2632_v53 = vld [vmem:[%s4970_s4 + $0xa4] ss:$8 sps:$4 sm:$0xff]   ;;  %v2634_v4 = vld [vmem:[%s4970_s4 + $0x20] ss:$8 sps:$4 sm:$0xff]   ;;  %v2201_v16 = vld [vmem:[%s4972_s7 + $0x98] sm:$0xff] }
 0x18d   :  { %v1110_v10 = vadd.f32 %v1043_v19, %v854_v60  ;;  %v1111_v50 = vadd.f32 %v1043_v19, %v855_v26  ;;  %2604 = vmatpush1.bf16.msra.mxu1 %v1236_v44  ;;  %2231 = vperm.xlu1 %2617, %v2185_v31   ;;  %v1239_v35 = vpack.c.bf16 %v1173_v2, %v1171_v9  ;;  %v1176_v56 = vmax.f32 %v1112_v28, 0.0  ;;  %v2635_v61 = vld [vmem:[%s4970_s4 + $0xa0] ss:$8 sps:$4 sm:$0xff]   ;;  %v2636_v5 = vld [vmem:[%s4970_s4 + $0x34] ss:$8 sps:$4 sm:$0xff]   ;;  %v4381_v24 = vpop.permute.xlu0 %1291 }
 0x18e   :  { %v1238_v62 = vpack.c.bf16 %v1172_v18, %v1170_v12  ;;  %v2199_v15 = vld [vmem:[%s4972_s7 + $0x88] sm:$0xff]  ;;  %v2638_v39 = vld [vmem:[%s4970_s4 + $0xb4] ss:$8 sps:$4 sm:$0xff]   ;;  %v2206_v51 = vld [vmem:[%s4972_s7 + $0xc0] sm:$0xff] }
 0x18f   :  { %v1174_v33 = vmax.f32 %v1110_v10, 0.0  ;;  %v1175_v27 = vmax.f32 %v1111_v50, 0.0  ;;  %1697 = vmatprep.subr.bf16.mxu0 %v1239_v35  ;;  %2589 = vmatprep.subr.bf16.mxu1 %v1239_v35  ;;  %v2640_v59 = vld [vmem:[%s4970_s4 + $0x30] ss:$8 sps:$4 sm:$0xff]   ;;  %v2207_v37 = vld [vmem:[%s4972_s7 + $0xc8] sm:$0xff]  ;;  %v2210_v12 = vld [vmem:[%s4972_s7 + $0xe0] sm:$0xff] }
 0x190   :  { %2266 = vperm.xlu0 %2616, %v2192_v47   ;;  %1698 = vmatpush1.bf16.msra.mxu0 %v1238_v62  ;;  %v4336_v40 = vpop.permute.xlu1 %1276  ;;  %v2641_v14 = vld [vmem:[%s4970_s4 + $0xb0] ss:$8 sps:$4 sm:$0xff]   ;;  %v2642_v49 = vld [vmem:[%s4970_s4 + $0x44] ss:$8 sps:$4 sm:$0xff]   ;;  %v2646_v43 = vld [vmem:[%s4970_s4 + $0x40] ss:$8 sps:$4 sm:$0xff]  }
 0x191   :  { %2605 = vmatpush1.bf16.msra.mxu1 %v1238_v62  ;;  %2241 = vperm.xlu1 %2617, %v2187_v42   ;;  %v1241_v45 = vpack.c.bf16 %v1177_v11, %v1175_v27  ;;  %v1240_v57 = vpack.c.bf16 %v1176_v56, %v1174_v33  ;;  %v2203_v30 = vld [vmem:[%s4972_s7 + $0xa8] sm:$0xff]  ;;  %v2208_v34 = vld [vmem:[%s4972_s7 + $0xd0] sm:$0xff]  ;;  %v2205_v32 = vld [vmem:[%s4972_s7 + $0xb8] sm:$0xff]  ;;  %v4397_v60 = vpop.permute.xlu0 %1301 }
 0x192   :  { %v2644_v63 = vld [vmem:[%s4970_s4 + $0xc4] ss:$8 sps:$4 sm:$0xff]   ;;  %v2647_v48 = vld [vmem:[%s4970_s4 + $0xc0] ss:$8 sps:$4 sm:$0xff]   ;;  %v2209_v26 = vld [vmem:[%s4972_s7 + $0xd8] sm:$0xff] }
 0x193   :  { %1699 = vmatprep.subr.bf16.mxu0 %v1241_v45  ;;  %2590 = vmatprep.subr.bf16.mxu1 %v1241_v45  ;;  %v2648_v44 = vld [vmem:[%s4970_s4 + $0x54] ss:$8 sps:$4 sm:$0xff]   ;;  %v1890_v9 = vld [vmem:[%s4971_s6 + $0xe0] sm:$0xff]  ;;  %v2652_v28 = vld [vmem:[%s4970_s4 + $0x50] ss:$8 sps:$4 sm:$0xff]  }
 0x194   :  { %2276 = vperm.xlu0 %2616, %v2194_v20   ;;  %1700 = vmatpush1.bf16.msra.mxu0 %v1240_v57  ;;  %v4358_v55 = vpop.permute.xlu1 %1286  ;;  %v1889_v2 = vld [vmem:[%s4971_s6 + $0xd8] sm:$0xff]  ;;  %v2211_v50 = vld [vmem:[%s4972_s7 + $0xe8] sm:$0xff]  ;;  %v1892_v27 = vld [vmem:[%s4971_s6 + $0xf0] sm:$0xff] }
 0x195   :  { %2606 = vmatpush1.bf16.msra.mxu1 %v1240_v57  ;;  %2251 = vperm.xlu1 %2617, %v2189_v21   ;;  %v2650_v29 = vld [vmem:[%s4970_s4 + $0xd4] ss:$8 sps:$4 sm:$0xff]   ;;  %v4419_v18 = vpop.permute.xlu0 %1311  ;;  %v2653_v10 = vld [vmem:[%s4970_s4 + $0xd0] ss:$8 sps:$4 sm:$0xff]   ;;  %v2654_v35 = vld [vmem:[%s4970_s4 + $0x64] ss:$8 sps:$4 sm:$0xff]  }
 0x196   :  { %v1891_v47 = vld [vmem:[%s4971_s6 + $0xe8] sm:$0xff]  ;;  %v2213_v11 = vld [vmem:[%s4972_s7 + $0xf8] sm:$0xff] }
 0x197   :  { %1702 = vmatmul.mubr.bf16.vlgmr.msra.gmra.mrb[0].mxu0 %v2618_v36  ;;  %v2656_v62 = vld [vmem:[%s4970_s4 + $0xe4] ss:$8 sps:$4 sm:$0xff]   ;;  %v2658_v56 = vld [vmem:[%s4970_s4 + $0x60] ss:$8 sps:$4 sm:$0xff]   ;;  %v2660_v20 = vld [vmem:[%s4970_s4 + $0x74] ss:$8 sps:$4 sm:$0xff]  }
 0x198   :  { %1782 = vmatmul.mubr.bf16.vlgmr.msra.gmra.mrb[0].mxu1 %v2621_v7  ;;  %2286 = vperm.xlu0 %2616, %v2196_v17   ;;  %v4383_v38 = vpop.permute.xlu1 %1296  ;;  %v2659_v45 = vld [vmem:[%s4970_s4 + $0xe0] ss:$8 sps:$4 sm:$0xff]   ;;  %v2662_v57 = vld [vmem:[%s4970_s4 + $0xf4] ss:$8 sps:$4 sm:$0xff]  }
 0x199   :  { %2261 = vperm.xlu1 %2617, %v2191_v0   ;;  %1711 = vmatprep.mubr.bf16.mxu0 %v2624_v22  ;;  %v4441_v42 = vpop.permute.xlu0 %1321  ;;  %v1893_v21 = vld [vmem:[%s4971_s6 + $0xf8] sm:$0xff]  ;;  %v2212_v17 = vld [vmem:[%s4972_s7 + $0xf0] sm:$0xff] }
 0x19a   :  { %1791 = vmatprep.mubr.bf16.mxu1 %v2626_v25  ;;  %v2664_v22 = vld [vmem:[%s4970_s4 + $0x70] ss:$8 sps:$4 sm:$0xff]  }
 0x19b   :  { %v2665_v0 = vld [vmem:[%s4970_s4 + $0xf0] ss:$8 sps:$4 sm:$0xff]  }
 0x19c   :  { %2296 = vperm.xlu0 %2616, %v2198_v52   ;;  %v4405_v31 = vpop.permute.xlu1 %1306 }
 0x19d   :  { %2271 = vperm.xlu1 %2617, %v2193_v1   ;;  %v4466_v36 = vpop.permute.xlu0 %1331 }
 0x19f   :  { %1712 = vmatmul.mubr.bf16.gmra.mrb[4].mxu0 %v2628_v3 }
 0x1a0   :  { %1792 = vmatmul.mubr.bf16.gmra.mrb[4].mxu1 %v2629_v46  ;;  %2306 = vperm.xlu0 %2616, %v2200_v23   ;;  %v4424_v19 = vpop.permute.xlu1 %1316 }
 0x1a1   :  { %2281 = vperm.xlu1 %2617, %v2195_v58   ;;  %1721 = vmatprep.mubr.bf16.mxu0 %v2630_v6  ;;  %v4479_v25 = vpop.permute.xlu0 %1341 }
 0x1a2   :  { %1801 = vmatprep.mubr.bf16.mxu1 %v2632_v53  ;;  %5291 = vst [vmem:[#allocation48_spill] sm:$0xff] %v4479_v25 }
 0x1a4   :  { %2316 = vperm.xlu0 %2616, %v2202_v8   ;;  %v4446_v33 = vpop.permute.xlu1 %1326 }
 0x1a5   :  { %2291 = vperm.xlu1 %2617, %v2197_v54   ;;  %v4483_v1 = vpop.permute.xlu0 %1351 }
 0x1a6   :  { %5293 = vst [vmem:[#allocation42_spill] sm:$0xff] %v4483_v1 }
 0x1a7   :  { %1722 = vmatmul.mubr.bf16.gmra.mrb[8].mxu0 %v2634_v4 }
 0x1a8   :  { %1802 = vmatmul.mubr.bf16.gmra.mrb[8].mxu1 %v2635_v61  ;;  %2326 = vperm.xlu0 %2616, %v2204_v13   ;;  %v4468_v7 = vpop.permute.xlu1 %1336 }
 0x1a9   :  { %2301 = vperm.xlu1 %2617, %v2199_v15   ;;  %1731 = vmatprep.mubr.bf16.mxu0 %v2636_v5  ;;  %5290 = vst [vmem:[#allocation46_spill] sm:$0xff] %v4468_v7  ;;  %v4485_v46 = vpop.permute.xlu0 %1361 }
 0x1aa   :  { %1811 = vmatprep.mubr.bf16.mxu1 %v2638_v39 }
 0x1ac   :  { %2336 = vperm.xlu0 %2616, %v2206_v51   ;;  %v4481_v52 = vpop.permute.xlu1 %1346 }
 0x1ad   :  { %2311 = vperm.xlu1 %2617, %v2201_v16   ;;  %5292 = vst [vmem:[#allocation45_spill] sm:$0xff] %v4481_v52  ;;  %v4489_v6 = vpop.permute.xlu0 %1371 }
 0x1af   :  { %1732 = vmatmul.mubr.bf16.gmra.mrb[12].mxu0 %v2640_v59 }
 0x1b0   :  { %1812 = vmatmul.mubr.bf16.gmra.mrb[12].mxu1 %v2641_v14  ;;  %2341 = vperm.xlu0 %2616, %v2207_v37   ;;  %v1357_v3 = vpop.permute.xlu1 %1356 }
 0x1b1   :  { %2321 = vperm.xlu1 %2617, %v2203_v30   ;;  %1741 = vmatprep.mubr.bf16.mxu0 %v2642_v49  ;;  %v4493_v53 = vpop.permute.xlu0 %1381 }
 0x1b2   :  { %1821 = vmatprep.mubr.bf16.mxu1 %v2644_v63 }
 0x1b4   :  { %2346 = vperm.xlu0 %2616, %v2208_v34   ;;  %v4487_v23 = vpop.permute.xlu1 %1366 }
 0x1b5   :  { %2331 = vperm.xlu1 %2617, %v2205_v32   ;;  %v4497_v54 = vpop.permute.xlu0 %1391 }
 0x1b7   :  { %1742 = vmatmul.mubr.bf16.gmra.mrb[16].mxu0 %v2646_v43 }
 0x1b8   :  { %1822 = vmatmul.mubr.bf16.gmra.mrb[16].mxu1 %v2647_v48  ;;  %2351 = vperm.xlu0 %2616, %v2209_v26   ;;  %v4491_v58 = vpop.permute.xlu1 %1376 }
 0x1b9   :  { %2031 = vperm.xlu1 %2617, %v1889_v2   ;;  %1751 = vmatprep.mubr.bf16.mxu0 %v2648_v44  ;;  %v4501_v61 = vpop.permute.xlu0 %1401 }
 0x1ba   :  { %1831 = vmatprep.mubr.bf16.mxu1 %v2650_v29 }
 0x1bc   :  { %2356 = vperm.xlu0 %2616, %v2210_v12   ;;  %v4495_v8 = vpop.permute.xlu1 %1386 }
 0x1bd   :  { %2036 = vperm.xlu1 %2617, %v1890_v9   ;;  %v4505_v5 = vpop.permute.xlu0 %1411 }
 0x1be   :  { %5294 = vst [vmem:[#allocation43_spill] sm:$0xff] %v4505_v5 }
 0x1bf   :  { %1752 = vmatmul.mubr.bf16.gmra.mrb[20].mxu0 %v2652_v28 }
 0x1c0   :  { %1832 = vmatmul.mubr.bf16.gmra.mrb[20].mxu1 %v2653_v10  ;;  %2361 = vperm.xlu0 %2616, %v2211_v50   ;;  %v4499_v4 = vpop.permute.xlu1 %1396 }
 0x1c1   :  { %2041 = vperm.xlu1 %2617, %v1891_v47   ;;  %1761 = vmatprep.mubr.bf16.mxu0 %v2654_v35  ;;  %v4509_v39 = vpop.permute.xlu0 %1421 }
 0x1c2   :  { %1841 = vmatprep.mubr.bf16.mxu1 %v2656_v62  ;;  %5296 = vst [vmem:[#allocation44_spill] sm:$0xff] %v4509_v39 }
 0x1c4   :  { %2371 = vperm.xlu0 %2616, %v2213_v11   ;;  %v4503_v13 = vpop.permute.xlu1 %1406 }
 0x1c5   :  { %2046 = vperm.xlu1 %2617, %v1892_v27   ;;  %v4513_v16 = vpop.permute.xlu0 %1431 }
 0x1c6   :  { %5298 = vst [vmem:[#allocation11_spill] sm:$0xff] %v4513_v16 }
 0x1c7   :  { %1762 = vmatmul.mubr.bf16.gmra.mrb[24].mxu0 %v2658_v56 }
 0x1c8   :  { %1842 = vmatmul.mubr.bf16.gmra.mrb[24].mxu1 %v2659_v45  ;;  %1771 = vmatprep.mubr.bf16.mxu0 %v2660_v20  ;;  %v4507_v15 = vpop.permute.xlu1 %1416 }
 0x1c9   :  { %2051 = vperm.xlu1 %2617, %v1893_v21   ;;  %1851 = vmatprep.mubr.bf16.mxu1 %v2662_v57  ;;  %5295 = vst [vmem:[#allocation47_spill] sm:$0xff] %v4507_v15  ;;  %v4515_v14 = vpop.permute.xlu0 %1901 }
 0x1cc   :  { %v4511_v51 = vpop.permute.xlu1 %1426 }
 0x1cd   :  { %2366 = vperm.xlu1 %2617, %v2212_v17   ;;  %5297 = vst [vmem:[#allocation49_spill] sm:$0xff] %v4511_v51  ;;  %v4519_v49 = vpop.permute.xlu0 %1911 }
 0x1cf   :  { %1772 = vmatmul.mubr.bf16.gmra.mrb[28].mxu0 %v2664_v22 }
 0x1d0   :  { %1852 = vmatmul.mubr.bf16.gmra.mrb[28].mxu1 %v2665_v0  ;;  %v1897_v59 = vpop.permute.xlu1 %1896 }
 0x1d1   :  { %v4523_v63 = vpop.permute.xlu0 %1921 }
 0x1d4   :  { %v4517_v37 = vpop.permute.xlu1 %1906 }
 0x1d5   :  { %v4527_v32 = vpop.permute.xlu0 %1931 }
 0x1d8   :  { %v4521_v30 = vpop.permute.xlu1 %1916 }
 0x1d9   :  { %v4531_v48 = vpop.permute.xlu0 %1941 }
 0x1dc   :  { %v4525_v34 = vpop.permute.xlu1 %1926 }
 0x1dd   :  { %v4535_v44 = vpop.permute.xlu0 %1951 }
 0x1de   :  { %5300 = vst [vmem:[#allocation5_spill] sm:$0xff] %v4535_v44 }
 0x1e0   :  { %v4529_v43 = vpop.permute.xlu1 %1936 }
 0x1e1   :  { %v4539_v29 = vpop.permute.xlu0 %1961 }
 0x1e2   :  { %5302 = vst [vmem:[#allocation72_spill] sm:$0xff] %v4539_v29 }
 0x1e4   :  { %v4533_v26 = vpop.permute.xlu1 %1946 }
 0x1e5   :  { %5299 = vst [vmem:[#allocation14_spill] sm:$0xff] %v4533_v26  ;;  %v4543_v9 = vpop.permute.xlu0 %1971 }
 0x1e6   :  { %5304 = vst [vmem:[#allocation50_spill] sm:$0xff] %v4543_v9 }
 0x1e8   :  { %v4537_v2 = vpop.permute.xlu1 %1956 }
 0x1e9   :  { %5301 = vst [vmem:[#allocation6_spill] sm:$0xff] %v4537_v2  ;;  %v4547_v10 = vpop.permute.xlu0 %1981 }
 0x1ea   :  { %5306 = vst [vmem:[#allocation7_spill] sm:$0xff] %v4547_v10 }
 0x1ec   :  { %v4541_v12 = vpop.permute.xlu1 %1966 }
 0x1ed   :  { %5303 = vst [vmem:[#allocation73_spill] sm:$0xff] %v4541_v12  ;;  %v4551_v35 = vpop.permute.xlu0 %1991 }
 0x1ee   :  { %5308 = vst [vmem:[#allocation53_spill] sm:$0xff] %v4551_v35 }
 0x1f0   :  { %v4545_v28 = vpop.permute.xlu1 %1976 }
 0x1f1   :  { %5305 = vst [vmem:[#allocation51_spill] sm:$0xff] %v4545_v28  ;;  %v4555_v62 = vpop.permute.xlu0 %2001 }
 0x1f2   :  { %5310 = vst [vmem:[#allocation9_spill] sm:$0xff] %v4555_v62 }
 0x1f4   :  { %v4549_v50 = vpop.permute.xlu1 %1986 }
 0x1f5   :  { %5307 = vst [vmem:[#allocation52_spill] sm:$0xff] %v4549_v50  ;;  %v4559_v27 = vpop.permute.xlu0 %2011 }
 0x1f6   :  { %5312 = vst [vmem:[#allocation17_spill] sm:$0xff] %v4559_v27  ;;  %v5316_v27 = vld [vmem:[#allocation33_spill] sm:$0xff] }
 0x1f8   :  { %v4553_v47 = vpop.permute.xlu1 %1996 }
 0x1f9   :  { %5309 = vst [vmem:[#allocation8_spill] sm:$0xff] %v4553_v47  ;;  %v4563_v45 = vpop.permute.xlu0 %2021 }
 0x1fa   :  { %5314 = vst [vmem:[#allocation54_spill] sm:$0xff] %v4563_v45  ;;  %v5317_v45 = vld [vmem:[#allocation30_spill] sm:$0xff] }
 0x1fc   :  { %v4557_v11 = vpop.permute.xlu1 %2006 }
 0x1fd   :  { %5311 = vst [vmem:[#allocation10_spill] sm:$0xff] %v4557_v11  ;;  %v2217_v57 = vpop.permute.xlu0 %2216  ;;  %v34_v11 = vld [vmem:[%s4973_s1] sm:$0x3] }
 0x1fe   :  { %v4582_v47 = vrot.slane %v34_v11, %v5317_v45 }
 0x200   :  { %v4561_v56 = vpop.permute.xlu1 %2016  ;;  %v1446_v50 = vmul.f32 %v4582_v47, %v4336_v40  ;;  %v1478_v12 = vmul.f32 %v4582_v47, %v1357_v3  ;;  %v1448_v51 = vmul.f32 %v4582_v47, %v4353_v41  ;;  %v1480_v39 = vmul.f32 %v4582_v47, %v4485_v46 }
 0x201   :  { %5313 = vst [vmem:[#allocation74_spill] sm:$0xff] %v4561_v56  ;;  %v4567_v17 = vpop.permute.xlu0 %2226  ;;  %v4579_v56 = vrot.slane %v34_v11, %v5316_v27 }
 0x203   :  { %v1477_v9 = vmul.f32 %v4579_v56, %v1357_v3  ;;  %v1447_v27 = vmul.f32 %v4579_v56, %v4353_v41  ;;  %v1479_v52 = vmul.f32 %v4579_v56, %v4485_v46  ;;  %v1451_v46 = vmul.f32 %v4579_v56, %v4381_v24 }
 0x204   :  { %v4565_v20 = vpop.permute.xlu1 %2026 }
 0x205   :  { %5315 = vst [vmem:[#allocation4_spill] sm:$0xff] %v4565_v20  ;;  %v4571_v0 = vpop.permute.xlu0 %2236  ;;  %v1445_v20 = vmul.f32 %v4579_v56, %v4336_v40 }
 0x208   :  { %v2222_v21 = vpop.permute.xlu1 %2221 }
 0x209   :  { %v4586_v35 = vpop.permute.xlu0 %2246 }
 0x20c   :  { %v4569_v22 = vpop.permute.xlu1 %2231 }
 0x210   :  { %v4576_v62 = vpop.permute.xlu1 %2241 }
 0x214   :  { %v4591_v10 = vpop.permute.xlu1 %2251 }
 0x26a   :  { %v1703_v28 = vpop.f32.mrb[0].mxu0 }
 0x26b   :  { %v1704_v11 = vadd.f32 %v1703_v28, %v1445_v20  ;;  %v1783_v45 = vpop.f32.mrb[0].mxu1  ;;  %v1705_v16 = vpop.f32.mrb[1].mxu0 }
 0x26c   :  { %v4600_v40 = vadd.f32 %v1783_v45, %v1477_v9  ;;  %v1706_v1 = vadd.f32 %v1705_v16, %v1446_v50  ;;  %v1785_v29 = vpop.f32.mrb[1].mxu1  ;;  %v1707_v2 = vpop.f32.mrb[2].mxu0 }
 0x26d   :  { %v2054_v15 = vadd.f32 %v1897_v59, %v1704_v11  ;;  %v4604_v7 = vadd.f32 %v1785_v29, %v1478_v12  ;;  %v1708_v3 = vadd.f32 %v1707_v2, %v1447_v27  ;;  %v1787_v28 = vpop.f32.mrb[2].mxu1  ;;  %v1709_v20 = vpop.f32.mrb[3].mxu0  ;;  %v1449_v2 = vmul.f32 %v4579_v56, %v4358_v55 }
 0x26e   :  { %v2055_v25 = vadd.f32 %v1897_v59, %v1706_v1  ;;  %v4606_v44 = vadd.f32 %v1787_v28, %v1479_v52  ;;  %v1710_v41 = vadd.f32 %v1709_v20, %v1448_v51  ;;  %v1789_v26 = vpop.f32.mrb[3].mxu1  ;;  %v4616_v29 = vpop.permute.xlu0 %2256  ;;  %v1452_v1 = vmul.f32 %v4582_v47, %v4381_v24 }
 0x26f   :  { %5318 = vst [vmem:[#allocation55_spill] sm:$0xff] %v4604_v7  ;;  %v2118_v5 = vmax.f32 %v2054_v15, 0.0  ;;  %v2056_v9 = vadd.f32 %v4515_v14, %v1708_v3  ;;  %v4609_v16 = vadd.f32 %v1789_v26, %v1480_v39  ;;  %v1450_v15 = vmul.f32 %v4582_v47, %v4358_v55  ;;  %v4624_v39 = vpop.permute.xlu1 %2261 }
 0x270   :  { %5319 = vst [vmem:[#allocation3_spill] sm:$0xff] %v4606_v44  ;;  %v2119_v50 = vmax.f32 %v2055_v25, 0.0  ;;  %v2057_v45 = vadd.f32 %v4515_v14, %v1710_v41  ;;  %v1481_v25 = vmul.f32 %v4579_v56, %v4487_v23  ;;  %v1482_v14 = vmul.f32 %v4582_v47, %v4487_v23 }
 0x271   :  { %5320 = vst [vmem:[#allocation15_spill] sm:$0xff] %v4609_v16  ;;  %v2120_v52 = vmax.f32 %v2056_v9, 0.0  ;;  %v2374_v26 = vmul.f32 %v2217_v57, %v2118_v5  ;;  %v1483_v16 = vmul.f32 %v4579_v56, %v4489_v6 }
 0x272   :  { %v2121_v51 = vmax.f32 %v2057_v45, 0.0  ;;  %v1713_v59 = vpop.f32.mrb[4].mxu0  ;;  %v2375_v28 = vmul.f32 %v2217_v57, %v2119_v50 }
 0x273   :  { %v2376_v12 = vmul.f32 %v2222_v21, %v2120_v52  ;;  %v1714_v27 = vadd.f32 %v1713_v59, %v1449_v2  ;;  %v1793_v11 = vpop.f32.mrb[4].mxu1  ;;  %v1715_v3 = vpop.f32.mrb[5].mxu0  ;;  %v1484_v2 = vmul.f32 %v4582_v47, %v4489_v6 }
 0x274   :  { %v2377_v24 = vmul.f32 %v2222_v21, %v2121_v51  ;;  %v4628_v20 = vadd.f32 %v1793_v11, %v1481_v25  ;;  %v1716_v55 = vadd.f32 %v1715_v3, %v1450_v15  ;;  %v1795_v41 = vpop.f32.mrb[5].mxu1  ;;  %v1717_v9 = vpop.f32.mrb[6].mxu0  ;;  %v1454_v3 = vmul.f32 %v4582_v47, %v4383_v38 }
 0x275   :  { %v2438_v45 = vadd.f32 %v2376_v12, %v2374_v26  ;;  %v2058_v44 = vadd.f32 %v4517_v37, %v1714_v27  ;;  %v4633_v7 = vadd.f32 %v1795_v41, %v1482_v14  ;;  %v1797_v23 = vpop.f32.mrb[6].mxu1  ;;  %v1719_v5 = vpop.f32.mrb[7].mxu0  ;;  %v1718_v50 = vadd.f32 %v1717_v9, %v1451_v46 }
 0x276   :  { %v2475_v57 = vadd.f32 %v2377_v24, %v2375_v28  ;;  %v2059_v21 = vadd.f32 %v4517_v37, %v1716_v55  ;;  %v1799_v52 = vpop.f32.mrb[7].mxu1  ;;  %v4638_v25 = vadd.f32 %v1797_v23, %v1483_v16  ;;  %v1720_v51 = vadd.f32 %v1719_v5, %v1452_v1  ;;  %v4643_v14 = vpop.permute.xlu0 %2266 }
 0x277   :  { %v2122_v15 = vmax.f32 %v2058_v44, 0.0  ;;  %v2060_v26 = vadd.f32 %v4519_v49, %v1718_v50  ;;  %v4641_v12 = vadd.f32 %v1799_v52, %v1484_v2  ;;  %v1455_v37 = vmul.f32 %v4579_v56, %v4397_v60  ;;  %v4651_v16 = vpop.permute.xlu1 %2271 }
 0x278   :  { %v2123_v59 = vmax.f32 %v2059_v21, 0.0  ;;  %v2061_v6 = vadd.f32 %v4519_v49, %v1720_v51  ;;  %v1453_v44 = vmul.f32 %v4579_v56, %v4383_v38  ;;  %v1485_v28 = vmul.f32 %v4579_v56, %v4491_v58 }
 0x279   :  { %v2378_v27 = vmul.f32 %v4567_v17, %v2122_v15  ;;  %v2124_v1 = vmax.f32 %v2060_v26, 0.0  ;;  %v1486_v9 = vmul.f32 %v4582_v47, %v4491_v58  ;;  %v1456_v50 = vmul.f32 %v4582_v47, %v4397_v60 }
 0x27a   :  { %v2379_v46 = vmul.f32 %v4567_v17, %v2123_v59  ;;  %v1723_v11 = vpop.f32.mrb[8].mxu0  ;;  %v2125_v49 = vmax.f32 %v2061_v6, 0.0  ;;  %v1487_v59 = vmul.f32 %v4579_v56, %v4493_v53  ;;  %v1488_v6 = vmul.f32 %v4582_v47, %v4493_v53 }
 0x27b   :  { %v2439_v24 = vadd.f32 %v2438_v45, %v2378_v27  ;;  %v1803_v55 = vpop.f32.mrb[8].mxu1  ;;  %v1725_v41 = vpop.f32.mrb[9].mxu0  ;;  %v2380_v5 = vmul.f32 %v4569_v22, %v2124_v1  ;;  %v1724_v2 = vadd.f32 %v1723_v11, %v1453_v44 }
 0x27c   :  { %v2476_v23 = vadd.f32 %v2475_v57, %v2379_v46  ;;  %v1805_v17 = vpop.f32.mrb[9].mxu1  ;;  %v1727_v21 = vpop.f32.mrb[10].mxu0  ;;  %v2381_v38 = vmul.f32 %v4569_v22, %v2125_v49  ;;  %v4664_v52 = vadd.f32 %v1803_v55, %v1485_v28  ;;  %v1726_v45 = vadd.f32 %v1725_v41, %v1454_v3 }
 0x27d   :  { %v1807_v15 = vpop.f32.mrb[10].mxu1  ;;  %v1729_v51 = vpop.f32.mrb[11].mxu0  ;;  %v2440_v58 = vadd.f32 %v2439_v24, %v2380_v5  ;;  %v2062_v57 = vadd.f32 %v4521_v30, %v1724_v2  ;;  %v4669_v26 = vadd.f32 %v1805_v17, %v1486_v9  ;;  %v1728_v44 = vadd.f32 %v1727_v21, %v1455_v37 }
 0x27e   :  { %v1809_v27 = vpop.f32.mrb[11].mxu1  ;;  %v2477_v60 = vadd.f32 %v2476_v23, %v2381_v38  ;;  %v2063_v22 = vadd.f32 %v4521_v30, %v1726_v45  ;;  %v4674_v1 = vadd.f32 %v1807_v15, %v1487_v59  ;;  %v1730_v11 = vadd.f32 %v1729_v51, %v1456_v50  ;;  %v4676_v3 = vpop.permute.xlu0 %2276 }
 0x27f   :  { %v2126_v46 = vmax.f32 %v2062_v57, 0.0  ;;  %v2064_v24 = vadd.f32 %v4523_v63, %v1728_v44  ;;  %v4679_v49 = vadd.f32 %v1809_v27, %v1488_v6  ;;  %v4681_v55 = vpop.permute.xlu1 %2281  ;;  %v1459_v30 = vmul.f32 %v4579_v56, %v4419_v18 }
 0x280   :  { %v2127_v28 = vmax.f32 %v2063_v22, 0.0  ;;  %v2065_v53 = vadd.f32 %v4523_v63, %v1730_v11  ;;  %v1457_v37 = vmul.f32 %v4579_v56, %v4405_v31  ;;  %v1458_v21 = vmul.f32 %v4582_v47, %v4405_v31 }
 0x281   :  { %v2382_v41 = vmul.f32 %v4571_v0, %v2126_v46  ;;  %v2128_v5 = vmax.f32 %v2064_v24, 0.0  ;;  %v1489_v50 = vmul.f32 %v4579_v56, %v4495_v8  ;;  %v1490_v51 = vmul.f32 %v4582_v47, %v4495_v8 }
 0x282   :  { %v1733_v9 = vpop.f32.mrb[12].mxu0  ;;  %v2383_v23 = vmul.f32 %v4571_v0, %v2127_v28  ;;  %v2129_v63 = vmax.f32 %v2065_v53, 0.0  ;;  %v1460_v22 = vmul.f32 %v4582_v47, %v4419_v18  ;;  %v1491_v11 = vmul.f32 %v4579_v56, %v4497_v54 }
 0x283   :  { %v1813_v2 = vpop.f32.mrb[12].mxu1  ;;  %v1735_v17 = vpop.f32.mrb[13].mxu0  ;;  %v2441_v38 = vadd.f32 %v2440_v58, %v2382_v41  ;;  %v2384_v57 = vmul.f32 %v4576_v62, %v2128_v5  ;;  %v1734_v0 = vadd.f32 %v1733_v9, %v1457_v37  ;;  %v1492_v24 = vmul.f32 %v4582_v47, %v4497_v54 }
 0x284   :  { %v1815_v45 = vpop.f32.mrb[13].mxu1  ;;  %v1737_v15 = vpop.f32.mrb[14].mxu0  ;;  %v2478_v59 = vadd.f32 %v2477_v60, %v2383_v23  ;;  %v2385_v31 = vmul.f32 %v4576_v62, %v2129_v63  ;;  %v4700_v44 = vadd.f32 %v1813_v2, %v1489_v50  ;;  %v1736_v58 = vadd.f32 %v1735_v17, %v1458_v21 }
 0x285   :  { %v1817_v27 = vpop.f32.mrb[14].mxu1  ;;  %v1739_v6 = vpop.f32.mrb[15].mxu0  ;;  %v2442_v28 = vadd.f32 %v2441_v38, %v2384_v57  ;;  %v2066_v8 = vadd.f32 %v4525_v34, %v1734_v0  ;;  %v4705_v60 = vadd.f32 %v1815_v45, %v1490_v51  ;;  %v1738_v53 = vadd.f32 %v1737_v15, %v1459_v30 }
 0x286   :  { %v1819_v46 = vpop.f32.mrb[15].mxu1  ;;  %v2479_v41 = vadd.f32 %v2478_v59, %v2385_v31  ;;  %v2067_v18 = vadd.f32 %v4525_v34, %v1736_v58  ;;  %v4710_v62 = vpop.permute.xlu0 %2286  ;;  %v4712_v37 = vadd.f32 %v1817_v27, %v1491_v11  ;;  %v1740_v23 = vadd.f32 %v1739_v6, %v1460_v22 }
 0x287   :  { %v2130_v9 = vmax.f32 %v2066_v8, 0.0  ;;  %v4714_v5 = vpop.permute.xlu1 %2291  ;;  %v2068_v17 = vadd.f32 %v4527_v32, %v1738_v53  ;;  %v4717_v21 = vadd.f32 %v1819_v46, %v1492_v24  ;;  %v1463_v63 = vmul.f32 %v4579_v56, %v4441_v42 }
 0x288   :  { %v2131_v2 = vmax.f32 %v2067_v18, 0.0  ;;  %v2069_v38 = vadd.f32 %v4527_v32, %v1740_v23  ;;  %v1461_v45 = vmul.f32 %v4579_v56, %v4424_v19  ;;  %v1462_v0 = vmul.f32 %v4582_v47, %v4424_v19 }
 0x289   :  { %v2386_v54 = vmul.f32 %v4586_v35, %v2130_v9  ;;  %v2132_v51 = vmax.f32 %v2068_v17, 0.0  ;;  %v1493_v27 = vmul.f32 %v4579_v56, %v4499_v4  ;;  %v1494_v58 = vmul.f32 %v4582_v47, %v4499_v4 }
 0x28a   :  { %v1743_v50 = vpop.f32.mrb[16].mxu0  ;;  %v2387_v15 = vmul.f32 %v4586_v35, %v2131_v2  ;;  %v2133_v6 = vmax.f32 %v2069_v38, 0.0  ;;  %v1464_v24 = vmul.f32 %v4582_v47, %v4441_v42  ;;  %v4745_v2 = vpop.permute.xlu0 %2296 }
 0x28b   :  { %v1823_v34 = vpop.f32.mrb[16].mxu1  ;;  %v1745_v30 = vpop.f32.mrb[17].mxu0  ;;  %v2443_v32 = vadd.f32 %v2442_v28, %v2386_v54  ;;  %v2388_v11 = vmul.f32 %v4591_v10, %v2132_v51  ;;  %v1744_v35 = vadd.f32 %v1743_v50, %v1461_v45  ;;  %v1495_v28 = vmul.f32 %v4579_v56, %v4501_v61 }
 0x28c   :  { %v1825_v59 = vpop.f32.mrb[17].mxu1  ;;  %v1747_v57 = vpop.f32.mrb[18].mxu0  ;;  %v2480_v46 = vadd.f32 %v2479_v41, %v2387_v15  ;;  %v2389_v19 = vmul.f32 %v4591_v10, %v2133_v6  ;;  %v4736_v18 = vadd.f32 %v1823_v34, %v1493_v27  ;;  %v1746_v53 = vadd.f32 %v1745_v30, %v1462_v0 }
 0x28d   :  { %v1827_v22 = vpop.f32.mrb[18].mxu1  ;;  %v1749_v31 = vpop.f32.mrb[19].mxu0  ;;  %v2444_v9 = vadd.f32 %v2443_v32, %v2388_v11  ;;  %v2070_v23 = vadd.f32 %v4529_v43, %v1744_v35  ;;  %v4741_v4 = vadd.f32 %v1825_v59, %v1494_v58  ;;  %v1496_v41 = vmul.f32 %v4582_v47, %v4501_v61 }
 0x28e   :  { %v1829_v8 = vpop.f32.mrb[19].mxu1  ;;  %v2481_v17 = vadd.f32 %v2480_v46, %v2389_v19  ;;  %v2071_v42 = vadd.f32 %v4529_v43, %v1746_v53  ;;  %v1748_v10 = vadd.f32 %v1747_v57, %v1463_v63  ;;  %v4748_v50 = vpop.permute.xlu1 %2301  ;;  %v4750_v38 = vadd.f32 %v1827_v22, %v1495_v28 }
 0x28f   :  { %v2134_v54 = vmax.f32 %v2070_v23, 0.0  ;;  %v1750_v34 = vadd.f32 %v1749_v31, %v1464_v24  ;;  %v4753_v51 = vadd.f32 %v1829_v8, %v1496_v41  ;;  %v1467_v57 = vmul.f32 %v4579_v56, %v4466_v36 }
 0x290   :  { %v2135_v45 = vmax.f32 %v2071_v42, 0.0  ;;  %v2072_v15 = vadd.f32 %v4531_v48, %v1748_v10  ;;  %v1465_v32 = vmul.f32 %v4579_v56, %v4446_v33  ;;  %v1466_v46 = vmul.f32 %v4582_v47, %v4446_v33  ;;  %v5321_v42 = vld [vmem:[#allocation43_spill] sm:$0xff]  ;;  %v4776_v10 = vpop.permute.xlu0 %2306 }
 0x291   :  { %v2390_v0 = vmul.f32 %v4616_v29, %v2134_v54  ;;  %v2073_v27 = vadd.f32 %v4531_v48, %v1750_v34  ;;  %v1497_v11 = vmul.f32 %v4579_v56, %v4503_v13  ;;  %v1498_v24 = vmul.f32 %v4582_v47, %v4503_v13  ;;  %v5322_v34 = vld [vmem:[#allocation14_spill] sm:$0xff] }
 0x292   :  { %v1753_v30 = vpop.f32.mrb[20].mxu0  ;;  %v2391_v6 = vmul.f32 %v4616_v29, %v2135_v45  ;;  %v2136_v22 = vmax.f32 %v2072_v15, 0.0  ;;  %v1468_v29 = vmul.f32 %v4582_v47, %v4466_v36  ;;  %v4783_v45 = vpop.permute.xlu1 %2311 }
 0x293   :  { %v1833_v59 = vpop.f32.mrb[20].mxu1  ;;  %v1755_v61 = vpop.f32.mrb[21].mxu0  ;;  %v2445_v48 = vadd.f32 %v2444_v9, %v2390_v0  ;;  %v2137_v35 = vmax.f32 %v2073_v27, 0.0  ;;  %v1754_v28 = vadd.f32 %v1753_v30, %v1465_v32  ;;  %v1499_v9 = vmul.f32 %v4579_v56, %v5321_v42 }
 0x294   :  { %v1835_v43 = vpop.f32.mrb[21].mxu1  ;;  %v1757_v63 = vpop.f32.mrb[22].mxu0  ;;  %v2482_v19 = vadd.f32 %v2481_v17, %v2391_v6  ;;  %v2392_v53 = vmul.f32 %v4624_v39, %v2136_v22  ;;  %v4772_v41 = vadd.f32 %v1833_v59, %v1497_v11  ;;  %v1756_v33 = vadd.f32 %v1755_v61, %v1466_v46  ;;  %v5323_v46 = vld [vmem:[#allocation5_spill] sm:$0xff] }
 0x295   :  { %v1837_v31 = vpop.f32.mrb[22].mxu1  ;;  %v1759_v58 = vpop.f32.mrb[23].mxu0  ;;  %v2393_v23 = vmul.f32 %v4624_v39, %v2137_v35  ;;  %v2074_v13 = vadd.f32 %v5322_v34, %v1754_v28  ;;  %v4779_v17 = vadd.f32 %v1835_v43, %v1498_v24  ;;  %v1500_v30 = vmul.f32 %v4582_v47, %v5321_v42  ;;  %v5326_v28 = vld [vmem:[#allocation46_spill] sm:$0xff]  ;;  %v5327_v42 = vld [vmem:[#allocation47_spill] sm:$0xff] }
 0x296   :  { %v1839_v8 = vpop.f32.mrb[23].mxu1  ;;  %v2446_v54 = vadd.f32 %v2445_v48, %v2392_v53  ;;  %v2075_v39 = vadd.f32 %v5322_v34, %v1756_v33  ;;  %v1758_v15 = vadd.f32 %v1757_v63, %v1467_v57  ;;  %v4786_v0 = vadd.f32 %v1837_v31, %v1499_v9  ;;  %v5325_v57 = vld [vmem:[#allocation48_spill] sm:$0xff] }
 0x297   :  { %v2483_v36 = vadd.f32 %v2482_v19, %v2393_v23  ;;  %v2138_v61 = vmax.f32 %v2074_v13, 0.0  ;;  %v1760_v27 = vadd.f32 %v1759_v58, %v1468_v29  ;;  %v4789_v11 = vadd.f32 %v1839_v8, %v1500_v30 }
 0x298   :  { %v2139_v22 = vmax.f32 %v2075_v39, 0.0  ;;  %v2076_v43 = vadd.f32 %v5323_v46, %v1758_v15  ;;  %v1471_v31 = vmul.f32 %v4579_v56, %v5325_v57  ;;  %v1469_v58 = vmul.f32 %v4579_v56, %v5326_v28 }
 0x299   :  { %5324 = vst [vmem:[#allocation16_spill] sm:$0xff] %v4789_v11  ;;  %v2394_v24 = vmul.f32 %v4643_v14, %v2138_v61  ;;  %v2077_v19 = vadd.f32 %v5323_v46, %v1760_v27  ;;  %v1470_v8 = vmul.f32 %v4582_v47, %v5326_v28  ;;  %v1501_v9 = vmul.f32 %v4579_v56, %v5327_v42  ;;  %v4807_v27 = vpop.permute.xlu0 %2316  ;;  %v5329_v28 = vld [vmem:[#allocation44_spill] sm:$0xff] }
 0x29a   :  { %v1763_v59 = vpop.f32.mrb[24].mxu0  ;;  %v2395_v29 = vmul.f32 %v4643_v14, %v2139_v22  ;;  %v2140_v23 = vmax.f32 %v2076_v43, 0.0  ;;  %v1502_v30 = vmul.f32 %v4582_v47, %v5327_v42  ;;  %v1472_v14 = vmul.f32 %v4582_v47, %v5325_v57 }
 0x29b   :  { %v1843_v32 = vpop.f32.mrb[24].mxu1  ;;  %v1765_v6 = vpop.f32.mrb[25].mxu0  ;;  %v2447_v34 = vadd.f32 %v2446_v54, %v2394_v24  ;;  %v2141_v13 = vmax.f32 %v2077_v19, 0.0  ;;  %v1764_v61 = vadd.f32 %v1763_v59, %v1469_v58  ;;  %v1503_v54 = vmul.f32 %v4579_v56, %v5329_v28 }
 0x29c   :  { %v1845_v48 = vpop.f32.mrb[25].mxu1  ;;  %v1767_v35 = vpop.f32.mrb[26].mxu0  ;;  %v2484_v39 = vadd.f32 %v2483_v36, %v2395_v29  ;;  %v2396_v15 = vmul.f32 %v4651_v16, %v2140_v23  ;;  %v4810_v46 = vadd.f32 %v1843_v32, %v1501_v9  ;;  %v1766_v43 = vadd.f32 %v1765_v6, %v1470_v8  ;;  %v5330_v36 = vld [vmem:[#allocation6_spill] sm:$0xff] }
 0x29d   :  { %v1847_v53 = vpop.f32.mrb[26].mxu1  ;;  %v1769_v63 = vpop.f32.mrb[27].mxu0  ;;  %v2397_v22 = vmul.f32 %v4651_v16, %v2141_v13  ;;  %v2078_v29 = vadd.f32 %v5330_v36, %v1764_v61  ;;  %v4817_v23 = vadd.f32 %v1845_v48, %v1502_v30  ;;  %v1504_v57 = vmul.f32 %v4582_v47, %v5329_v28  ;;  %v5333_v61 = vld [vmem:[#allocation72_spill] sm:$0xff]  ;;  %v5335_v28 = vld [vmem:[#allocation42_spill] sm:$0xff] }
 0x29e   :  { %v1849_v33 = vpop.f32.mrb[27].mxu1  ;;  %5328 = vst [vmem:[#allocation19_spill] sm:$0xff] %v4810_v46  ;;  %v4814_v24 = vpop.permute.xlu1 %2321  ;;  %v2448_v19 = vadd.f32 %v2447_v34, %v2396_v15  ;;  %v2079_v16 = vadd.f32 %v5330_v36, %v1766_v43  ;;  %v1768_v32 = vadd.f32 %v1767_v35, %v1471_v31  ;;  %v4822_v9 = vadd.f32 %v1847_v53, %v1503_v54 }
 0x29f   :  { %5331 = vst [vmem:[#allocation76_spill] sm:$0xff] %v4817_v23  ;;  %v2485_v58 = vadd.f32 %v2484_v39, %v2397_v22  ;;  %v2142_v8 = vmax.f32 %v2078_v29, 0.0  ;;  %v1770_v13 = vadd.f32 %v1769_v63, %v1472_v14  ;;  %v4825_v30 = vadd.f32 %v1849_v33, %v1504_v57  ;;  %v5336_v63 = vld [vmem:[#allocation45_spill] sm:$0xff]  ;;  %v4835_v43 = vpop.permute.xlu0 %2326 }
 0x2a0   :  { %5332 = vst [vmem:[#allocation12_spill] sm:$0xff] %v4822_v9  ;;  %v2143_v15 = vmax.f32 %v2079_v16, 0.0  ;;  %v2080_v48 = vadd.f32 %v5333_v61, %v1768_v32  ;;  %v1475_v39 = vmul.f32 %v4579_v56, %v5335_v28  ;;  %v1476_v53 = vmul.f32 %v4582_v47, %v5335_v28  ;;  %v5337_v29 = vld [vmem:[#allocation49_spill] sm:$0xff] }
 0x2a1   :  { %5334 = vst [vmem:[#allocation56_spill] sm:$0xff] %v4825_v30  ;;  %v2398_v35 = vmul.f32 %v4676_v3, %v2142_v8  ;;  %v2081_v31 = vadd.f32 %v5333_v61, %v1770_v13  ;;  %v1473_v14 = vmul.f32 %v4579_v56, %v5336_v63  ;;  %v1474_v36 = vmul.f32 %v4582_v47, %v5336_v63  ;;  %v5338_v30 = vld [vmem:[#allocation11_spill] sm:$0xff] }
 0x2a2   :  { %v1773_v59 = vpop.f32.mrb[28].mxu0  ;;  %v2399_v33 = vmul.f32 %v4676_v3, %v2143_v15  ;;  %v2144_v54 = vmax.f32 %v2080_v48, 0.0  ;;  %v1505_v57 = vmul.f32 %v4579_v56, %v5337_v29  ;;  %v1506_v8 = vmul.f32 %v4582_v47, %v5337_v29 }
 0x2a3   :  { %v1853_v42 = vpop.f32.mrb[28].mxu1  ;;  %v1775_v6 = vpop.f32.mrb[29].mxu0  ;;  %v2449_v16 = vadd.f32 %v2448_v19, %v2398_v35  ;;  %v2145_v32 = vmax.f32 %v2081_v31, 0.0  ;;  %v1774_v28 = vadd.f32 %v1773_v59, %v1473_v14  ;;  %v1507_v9 = vmul.f32 %v4579_v56, %v5338_v30  ;;  %v5339_v31 = vld [vmem:[#allocation73_spill] sm:$0xff]  ;;  %v5340_v59 = vld [vmem:[#allocation51_spill] sm:$0xff] }
 0x2a4   :  { %v1855_v46 = vpop.f32.mrb[29].mxu1  ;;  %v1777_v34 = vpop.f32.mrb[30].mxu0  ;;  %v2486_v13 = vadd.f32 %v2485_v58, %v2399_v33  ;;  %v2400_v61 = vmul.f32 %v4681_v55, %v2144_v54  ;;  %v4848_v15 = vadd.f32 %v1853_v42, %v1505_v57  ;;  %v1776_v48 = vadd.f32 %v1775_v6, %v1474_v36  ;;  %v5341_v6 = vld [vmem:[#allocation55_spill] sm:$0xff] }
 0x2a5   :  { %v1857_v23 = vpop.f32.mrb[30].mxu1  ;;  %v1779_v11 = vpop.f32.mrb[31].mxu0  ;;  %v2401_v3 = vmul.f32 %v4681_v55, %v2145_v32  ;;  %v1508_v63 = vmul.f32 %v4582_v47, %v5338_v30  ;;  %v2082_v29 = vadd.f32 %v5339_v31, %v1774_v28  ;;  %v4855_v58 = vadd.f32 %v1855_v46, %v1506_v8  ;;  %v5342_v57 = vld [vmem:[#allocation3_spill] sm:$0xff]  ;;  %v5344_v8 = vld [vmem:[#allocation50_spill] sm:$0xff] }
 0x2a6   :  { %v1859_v22 = vpop.f32.mrb[31].mxu1  ;;  %v4852_v19 = vpop.permute.xlu1 %2331  ;;  %v2450_v35 = vadd.f32 %v2449_v16, %v2400_v61  ;;  %v2086_v14 = vadd.f32 %v5340_v59, %v4600_v40  ;;  %v2083_v56 = vadd.f32 %v5339_v31, %v1776_v48  ;;  %v1778_v55 = vadd.f32 %v1777_v34, %v1475_v39  ;;  %v5343_v16 = vld [vmem:[#allocation7_spill] sm:$0xff] }
 0x2a7   :  { %v2487_v33 = vadd.f32 %v2486_v13, %v2401_v3  ;;  %v4860_v42 = vpop.permute.xlu0 %2336  ;;  %v2087_v54 = vadd.f32 %v5340_v59, %v5341_v6  ;;  %v2146_v47 = vmax.f32 %v2082_v29, 0.0  ;;  %v4864_v30 = vadd.f32 %v1857_v23, %v1507_v9  ;;  %v5345_v13 = vld [vmem:[#allocation15_spill] sm:$0xff]  ;;  %v5346_v23 = vld [vmem:[#allocation52_spill] sm:$0xff] }
 0x2a8   :  { %v1780_v36 = vadd.f32 %v1779_v11, %v1476_v53  ;;  %v2088_v46 = vadd.f32 %v5343_v16, %v5342_v57  ;;  %v2147_v32 = vmax.f32 %v2083_v56, 0.0  ;;  %v2084_v61 = vadd.f32 %v5344_v8, %v1778_v55  ;;  %v5347_v56 = vld [vmem:[#allocation53_spill] sm:$0xff] }
 0x2a9   :  { %v4869_v40 = vadd.f32 %v1859_v22, %v1508_v63  ;;  %v2089_v34 = vadd.f32 %v5343_v16, %v5345_v13  ;;  %v2402_v39 = vmul.f32 %v4710_v62, %v2146_v47  ;;  %v2150_v3 = vmax.f32 %v2086_v14, 0.0 }
 0x2aa   :  { %v2085_v28 = vadd.f32 %v5344_v8, %v1780_v36  ;;  %v2090_v9 = vadd.f32 %v5346_v23, %v4628_v20  ;;  %v2403_v11 = vmul.f32 %v4710_v62, %v2147_v32  ;;  %v2148_v53 = vmax.f32 %v2084_v61, 0.0  ;;  %v4878_v48 = vpop.permute.xlu1 %2031 }
 0x2ab   :  { %v2151_v31 = vmax.f32 %v2087_v54, 0.0  ;;  %v2091_v22 = vadd.f32 %v5346_v23, %v4633_v7  ;;  %v2451_v63 = vadd.f32 %v2450_v35, %v2402_v39  ;;  %v2152_v59 = vmax.f32 %v2088_v46, 0.0  ;;  %v4885_v47 = vpop.permute.xlu0 %2341  ;;  %v5348_v35 = vld [vmem:[#allocation8_spill] sm:$0xff]  ;;  %v5350_v23 = vld [vmem:[#allocation10_spill] sm:$0xff] }
 0x2ac   :  { %v2149_v29 = vmax.f32 %v2085_v28, 0.0  ;;  %v2092_v55 = vadd.f32 %v5347_v56, %v4638_v25  ;;  %v2488_v6 = vadd.f32 %v2487_v33, %v2403_v11  ;;  %v2404_v14 = vmul.f32 %v4714_v5, %v2148_v53 }
 0x2ad   :  { %v2153_v20 = vmax.f32 %v2089_v34, 0.0  ;;  %v2093_v62 = vadd.f32 %v5347_v56, %v4641_v12  ;;  %v2406_v36 = vmul.f32 %v4745_v2, %v2150_v3  ;;  %v2154_v7 = vmax.f32 %v2090_v9, 0.0  ;;  %v5349_v12 = vld [vmem:[#allocation9_spill] sm:$0xff] }
 0x2ae   :  { %v2405_v54 = vmul.f32 %v4714_v5, %v2149_v29  ;;  %v2094_v57 = vadd.f32 %v5348_v35, %v4664_v52  ;;  %v2452_v16 = vadd.f32 %v2451_v63, %v2404_v14  ;;  %v2407_v25 = vmul.f32 %v4745_v2, %v2151_v31  ;;  %v4899_v34 = vpop.permute.xlu1 %2036  ;;  %v5351_v29 = vld [vmem:[#allocation17_spill] sm:$0xff] }
 0x2af   :  { %v2155_v33 = vmax.f32 %v2091_v22, 0.0  ;;  %v2095_v46 = vadd.f32 %v5348_v35, %v4669_v26  ;;  %v2408_v8 = vmul.f32 %v4748_v50, %v2152_v59  ;;  %v2156_v61 = vmax.f32 %v2092_v55, 0.0  ;;  %v4907_v53 = vpop.permute.xlu0 %2346 }
 0x2b0   :  { %v2489_v32 = vadd.f32 %v2488_v6, %v2405_v54  ;;  %v2096_v5 = vadd.f32 %v5349_v12, %v4674_v1  ;;  %v2453_v13 = vadd.f32 %v2452_v16, %v2406_v36  ;;  %v2409_v39 = vmul.f32 %v4748_v50, %v2153_v20 }
 0x2b1   :  { %v2157_v52 = vmax.f32 %v2093_v62, 0.0  ;;  %v2097_v2 = vadd.f32 %v5349_v12, %v4679_v49  ;;  %v2410_v3 = vmul.f32 %v4776_v10, %v2154_v7  ;;  %v2158_v26 = vmax.f32 %v2094_v57, 0.0 }
 0x2b2   :  { %v2490_v28 = vadd.f32 %v2489_v32, %v2407_v25  ;;  %v2098_v9 = vadd.f32 %v5350_v23, %v4700_v44  ;;  %v2454_v11 = vadd.f32 %v2453_v13, %v2408_v8  ;;  %v2411_v1 = vmul.f32 %v4776_v10, %v2155_v33  ;;  %v2042_v36 = vpop.permute.xlu1 %2041 }
 0x2b3   :  { %v2159_v31 = vmax.f32 %v2095_v46, 0.0  ;;  %v2099_v50 = vadd.f32 %v5350_v23, %v4705_v60  ;;  %v2412_v63 = vmul.f32 %v4783_v45, %v2156_v61  ;;  %v2160_v49 = vmax.f32 %v2096_v5, 0.0  ;;  %v5352_v60 = vld [vmem:[#allocation74_spill] sm:$0xff]  ;;  %v2352_v46 = vpop.permute.xlu0 %2351 }
 0x2b4   :  { %v2491_v22 = vadd.f32 %v2490_v28, %v2409_v39  ;;  %v2100_v59 = vadd.f32 %v5351_v29, %v4712_v37  ;;  %v2455_v56 = vadd.f32 %v2454_v11, %v2410_v3  ;;  %v2413_v55 = vmul.f32 %v4783_v45, %v2157_v52 }
 0x2b5   :  { %v2161_v44 = vmax.f32 %v2097_v2, 0.0  ;;  %v2101_v6 = vadd.f32 %v5351_v29, %v4717_v21  ;;  %v2414_v10 = vmul.f32 %v4807_v27, %v2158_v26  ;;  %v2162_v20 = vmax.f32 %v2098_v9, 0.0  ;;  %v5353_v21 = vld [vmem:[#allocation54_spill] sm:$0xff]  ;;  %v5357_v29 = vld [vmem:[#allocation76_spill] sm:$0xff] }
 0x2b6   :  { %v2492_v14 = vadd.f32 %v2491_v22, %v2411_v1  ;;  %v2102_v62 = vadd.f32 %v5352_v60, %v4736_v18  ;;  %v2456_v54 = vadd.f32 %v2455_v56, %v2412_v63  ;;  %v2415_v7 = vmul.f32 %v4807_v27, %v2159_v31  ;;  %v2047_v26 = vpop.permute.xlu1 %2046 }
 0x2b7   :  { %v2163_v35 = vmax.f32 %v2099_v50, 0.0  ;;  %v2103_v37 = vadd.f32 %v5352_v60, %v4741_v4  ;;  %v2416_v57 = vmul.f32 %v4814_v24, %v2160_v49  ;;  %v2164_v16 = vmax.f32 %v2100_v59, 0.0  ;;  %v5354_v4 = vld [vmem:[#allocation4_spill] sm:$0xff]  ;;  %v2357_v63 = vpop.permute.xlu0 %2356 }
 0x2b8   :  { %v2493_v45 = vadd.f32 %v2492_v14, %v2413_v55  ;;  %v2104_v25 = vadd.f32 %v5353_v21, %v4750_v38  ;;  %v2457_v33 = vadd.f32 %v2456_v54, %v2414_v10  ;;  %v2417_v32 = vmul.f32 %v4814_v24, %v2161_v44 }
 0x2b9   :  { %v2165_v18 = vmax.f32 %v2101_v6, 0.0  ;;  %v2105_v8 = vadd.f32 %v5353_v21, %v4753_v51  ;;  %v2418_v61 = vmul.f32 %v4835_v43, %v2162_v20  ;;  %v2166_v12 = vmax.f32 %v2102_v62, 0.0  ;;  %v5359_v20 = vld [vmem:[#allocation56_spill] sm:$0xff] }
 0x2ba   :  { %v2494_v27 = vadd.f32 %v2493_v45, %v2415_v7  ;;  %v2106_v5 = vadd.f32 %v5354_v4, %v4772_v41  ;;  %v2458_v13 = vadd.f32 %v2457_v33, %v2416_v57  ;;  %v2419_v39 = vmul.f32 %v4835_v43, %v2163_v35  ;;  %v5355_v41 = vld [vmem:[#allocation16_spill] sm:$0xff] }
 0x2bb   :  { %v2167_v52 = vmax.f32 %v2103_v37, 0.0  ;;  %v2107_v38 = vadd.f32 %v5354_v4, %v4779_v17  ;;  %v2420_v24 = vmul.f32 %v4852_v19, %v2164_v16  ;;  %v2168_v28 = vmax.f32 %v2104_v25, 0.0  ;;  %v5356_v17 = vld [vmem:[#allocation19_spill] sm:$0xff] }
 0x2bc   :  { %v2495_v2 = vadd.f32 %v2494_v27, %v2417_v32  ;;  %v2108_v51 = vadd.f32 %v4878_v48, %v4786_v0  ;;  %v2459_v3 = vadd.f32 %v2458_v13, %v2418_v61  ;;  %v2421_v23 = vmul.f32 %v4852_v19, %v2165_v18 }
 0x2bd   :  { %v2169_v9 = vmax.f32 %v2105_v8, 0.0  ;;  %v2109_v11 = vadd.f32 %v4878_v48, %v5355_v41  ;;  %v2422_v1 = vmul.f32 %v4860_v42, %v2166_v12  ;;  %v2170_v31 = vmax.f32 %v2106_v5, 0.0  ;;  %v5358_v48 = vld [vmem:[#allocation12_spill] sm:$0xff] }
 0x2be   :  { %v2496_v43 = vadd.f32 %v2495_v2, %v2419_v39  ;;  %v2110_v50 = vadd.f32 %v4899_v34, %v5356_v17  ;;  %v2460_v22 = vadd.f32 %v2459_v3, %v2420_v24  ;;  %v2423_v49 = vmul.f32 %v4860_v42, %v2167_v52 }
 0x2bf   :  { %v2171_v0 = vmax.f32 %v2107_v38, 0.0  ;;  %v2111_v59 = vadd.f32 %v4899_v34, %v5357_v29  ;;  %v2424_v56 = vmul.f32 %v4885_v47, %v2168_v28  ;;  %v2172_v55 = vmax.f32 %v2108_v51, 0.0  ;;  %v2052_v34 = vpop.permute.xlu1 %2051 }
 0x2c0   :  { %v2497_v19 = vadd.f32 %v2496_v43, %v2421_v23  ;;  %v2112_v44 = vadd.f32 %v2042_v36, %v5358_v48  ;;  %v2461_v6 = vadd.f32 %v2460_v22, %v2422_v1  ;;  %v2425_v14 = vmul.f32 %v4885_v47, %v2169_v9 }
 0x2c1   :  { %v2173_v10 = vmax.f32 %v2109_v11, 0.0  ;;  %v2113_v60 = vadd.f32 %v2042_v36, %v5359_v20  ;;  %v2426_v54 = vmul.f32 %v4907_v53, %v2170_v31  ;;  %v2174_v42 = vmax.f32 %v2110_v50, 0.0  ;;  %v2362_v36 = vpop.permute.xlu0 %2361 }
 0x2c2   :  { %v2498_v62 = vadd.f32 %v2497_v19, %v2423_v49  ;;  %v2114_v7 = vadd.f32 %v2047_v26, %v4848_v15  ;;  %v2462_v35 = vadd.f32 %v2461_v6, %v2424_v56  ;;  %v2427_v37 = vmul.f32 %v4907_v53, %v2171_v0 }
 0x2c3   :  { %v2175_v45 = vmax.f32 %v2111_v59, 0.0  ;;  %v2115_v57 = vadd.f32 %v2047_v26, %v4855_v58  ;;  %v2428_v21 = vmul.f32 %v2352_v46, %v2172_v55  ;;  %v2176_v25 = vmax.f32 %v2112_v44, 0.0  ;;  %v2367_v52 = vpop.permute.xlu1 %2366 }
 0x2c4   :  { %v2499_v16 = vadd.f32 %v2498_v62, %v2425_v14  ;;  %v2116_v47 = vadd.f32 %v2052_v34, %v4864_v30  ;;  %v2463_v33 = vadd.f32 %v2462_v35, %v2426_v54  ;;  %v2429_v32 = vmul.f32 %v2352_v46, %v2173_v10  ;;  %v5360_v10 = vld [vmem:[#allocation29_spill] sm:$0xff] }
 0x2c5   :  { %v2177_v18 = vmax.f32 %v2113_v60, 0.0  ;;  %v2117_v8 = vadd.f32 %v2052_v34, %v4869_v40  ;;  %v2430_v15 = vmul.f32 %v2357_v63, %v2174_v42  ;;  %v2178_v61 = vmax.f32 %v2114_v7, 0.0  ;;  %v2372_v46 = vpop.permute.xlu0 %2371 }
 0x2c6   :  { %v2500_v27 = vadd.f32 %v2499_v16, %v2427_v37  ;;  %v2464_v12 = vadd.f32 %v2463_v33, %v2428_v21  ;;  %v2431_v4 = vmul.f32 %v2357_v63, %v2175_v45  ;;  %v2179_v53 = vmax.f32 %v2115_v57, 0.0 }
 0x2c7   :  { %v2432_v13 = vmul.f32 %v2362_v36, %v2176_v25  ;;  %v2180_v58 = vmax.f32 %v2116_v47, 0.0  ;;  %v2433_v38 = vmul.f32 %v2362_v36, %v2177_v18  ;;  %v2181_v2 = vmax.f32 %v2117_v8, 0.0 }
 0x2c8   :  { %v2501_v5 = vadd.f32 %v2500_v27, %v2429_v32  ;;  %v2465_v39 = vadd.f32 %v2464_v12, %v2430_v15  ;;  %v2434_v24 = vmul.f32 %v2367_v52, %v2178_v61  ;;  %v2435_v51 = vmul.f32 %v2367_v52, %v2179_v53 }
 0x2c9   :  { %v2436_v40 = vmul.f32 %v2372_v46, %v2180_v58  ;;  %v2437_v23 = vmul.f32 %v2372_v46, %v2181_v2  ;;  %v2669_v63 = vmov 1966171168   ;;  %v2513_v19 = vstv %s4974_s8 }
 0x2ca   :  { %v2502_v30 = vadd.f32 %v2501_v5, %v2431_v4  ;;  %v2466_v28 = vadd.f32 %v2465_v39, %v2432_v13  ;;  %v2520_v49 = vunpack.c.l.s4 %v2669_v63  ;;  %v5361_v54 = vlaneseq }
 0x2cc   :  { %v2503_v3 = vadd.f32 %v2502_v30, %v2433_v38  ;;  %v2467_v26 = vadd.f32 %v2466_v28, %v2434_v24  ;;  %v2521_v55 = vunpack.c.0.s8 %v2520_v49  ;;  %vm2536_vm0 = vcmp.lt.s32.totalorder %v5361_v54, 256 }
 0x2ce   :  { %v2504_v9 = vadd.f32 %v2503_v3, %v2435_v51  ;;  %v2468_v41 = vadd.f32 %v2467_v26, %v2436_v40  ;;  %v2524_v20 = vsub.s32 %v2521_v55, %v5360_v10 }
 0x2d0   :  { %v2505_v11 = vadd.f32 %v2504_v9, %v2437_v23  ;;  %v2469_v43 = vrot.slane %v2468_v41, 4 }
 0x2d2   :  { %v2506_v1 = vrot.slane %v2505_v11, 4  ;;  %v2470_v31 = vadd.f32 %v2469_v43, %v2468_v41 }
 0x2d4   :  { %v2507_v17 = vadd.f32 %v2506_v1, %v2505_v11  ;;  %v2471_v50 = vrot.slane %v2470_v31, 2 }
 0x2d6   :  { %v2508_v22 = vrot.slane %v2507_v17, 2  ;;  %v2472_v0 = vadd.f32 %v2471_v50, %v2470_v31 }
 0x2d8   :  { %v2509_v29 = vadd.f32 %v2508_v22, %v2507_v17  ;;  %v2473_v59 = vrot.slane %v2472_v0, 1 }
 0x2da   :  { %v2510_v56 = vrot.slane %v2509_v29, 1  ;;  %v2474_v48 = vadd.f32 %v2473_v59, %v2472_v0 }
 0x2dc   :  { %v2511_v44 = vadd.f32 %v2510_v56, %v2509_v29  ;;  %v2514_v6 = vadd.f32 %v2513_v19, %v2474_v48 }
 0x2de   :  { %v2515_v14 = vadd.f32 %v2513_v19, %v2511_v44 }
 0x2e0   :  { %v2518_v60 = vcombine.low %v2514_v6, %v2515_v14 }
 0x2e2   :  { %v2525_v62 = vrot.slane %v2518_v60, %v2524_v20 }
 0x2e4   :  { %v2532_v42 = vrot.slane %v2525_v62, %v2524_v20 }
 0x2e6   :  { %2538 = vst.msk [vmem:[%s4975_s9] sm:$0x3] %vm2536_vm0, %v2532_v42 }

</bundles_post_ra>
